<compile_context>
chip_gen: v7x
topology: tpu7x:2x2x1
jax: 0.10.0
libtpu: 0.0.40
codegen_flags: <defaults>
</compile_context>

<pallas_src>
import functools
import math

import jax
import jax.numpy as jnp
from jax import lax
from jax.experimental import pallas as pl
from jax.experimental.pallas import tpu as pltpu

EPS = 1e-6
MXU_DTYPE = jnp.bfloat16          # set to jnp.float32 for exact f32 matmuls
VMEM_LIMIT_BYTES = 32 * 1024 * 1024   # safe on v5e/v6e (128 MiB) and v7x (64 MiB)


def _compiler_params():
    return pltpu.CompilerParams(
        dimension_semantics=("parallel",),
        vmem_limit_bytes=VMEM_LIMIT_BYTES,
    )


def _row_tile(m):
    # Largest row tile (multiple of 8) that divides M; keeps blocks legal and
    # bounded so the kernels stay portable to v7x's smaller VMEM.
    for t in (512, 256, 128, 64, 32, 16, 8):
        if m % t == 0:
            return t
    return m


def _layernorm_f32(x, g, b):
    # PyTorch LayerNorm-from-scratch: unbiased std (N-1), divide by (std + eps).
    d = x.shape[-1]
    mean = jnp.mean(x, axis=-1, keepdims=True)
    xc = x - mean
    var = jnp.sum(xc * xc, axis=-1, keepdims=True) / (d - 1)
    return g * xc / (jnp.sqrt(var) + EPS) + b


# ----------------------------------------------------------------------------
# Pallas kernels
# ----------------------------------------------------------------------------
def attn_sublayer_kernel(x_ref, kv_ref, mask_ref, g_ref, b_ref,
                         wq_ref, bq_ref, wkv_ref, bkv_ref, wo_ref, bo_ref,
                         o_ref, *, head, self_attention):
    # One batch element: x:(Sq,D) residual input, kv:(Sk,D) key/value source
    # (memory for cross-attention; unused for self-attention), mask:(Sq,Sk).
    x = x_ref[...]
    D = x.shape[-1]
    dk = D // head
    scale = 1.0 / math.sqrt(dk)

    # SublayerConnection: norm applied to x only (f32 statistics).
    y = _layernorm_f32(x, g_ref[...], b_ref[...])

    kv_src = y if self_attention else kv_ref[...]

    # Projections on the MXU (bf16 in, f32 accumulate). K/V weights fused.
    q = jnp.dot(y.astype(wq_ref.dtype), wq_ref[...],
                preferred_element_type=jnp.float32) + bq_ref[...]
    kvp = jnp.dot(kv_src.astype(wkv_ref.dtype), wkv_ref[...],
                  preferred_element_type=jnp.float32) + bkv_ref[...]
    k = kvp[:, :D]
    v = kvp[:, D:]

    mask = mask_ref[...]
    ctx_heads = []
    for h in range(head):                      # static unroll over heads
        sl = slice(h * dk, (h + 1) * dk)
        qh = q[:, sl].astype(wq_ref.dtype)
        kh = k[:, sl].astype(wq_ref.dtype)
        vh = v[:, sl].astype(wq_ref.dtype)
        # Contract last dims of Q and K: no explicit transpose of K.
        s = lax.dot_general(qh, kh, (((1,), (1,)), ((), ())),
                            preferred_element_type=jnp.float32) * scale
        s = jnp.where(mask == 0, -1e9, s)
        s_max = jnp.max(s, axis=-1, keepdims=True)
        e = jnp.exp(s - s_max)
        prob = e * pl.reciprocal(jnp.sum(e, axis=-1, keepdims=True), approx=True)
        ctx_heads.append(
            jnp.dot(prob.astype(wq_ref.dtype), vh,
                    preferred_element_type=jnp.float32))
    ctx = jnp.concatenate(ctx_heads, axis=-1)   # (Sq, D)

    out = jnp.dot(ctx.astype(wo_ref.dtype), wo_ref[...],
                  preferred_element_type=jnp.float32) + bo_ref[...]
    o_ref[...] = x + out                        # residual add fused in-kernel


def ffn_sublayer_kernel(x_ref, g_ref, b_ref, w1_ref, b1_ref, w2_ref, b2_ref,
                        o_ref):
    # o = x + W2(relu(W1(LN(x)))), all inside one kernel.
    x = x_ref[...]
    y = _layernorm_f32(x, g_ref[...], b_ref[...])
    h = jnp.dot(y.astype(w1_ref.dtype), w1_ref[...],
                preferred_element_type=jnp.float32) + b1_ref[...]
    h = jnp.maximum(h, 0.0)
    ff = jnp.dot(h.astype(w2_ref.dtype), w2_ref[...],
                 preferred_element_type=jnp.float32) + b2_ref[...]
    o_ref[...] = x + ff


def layernorm_kernel(x_ref, g_ref, b_ref, o_ref):
    o_ref[...] = _layernorm_f32(x_ref[...], g_ref[...], b_ref[...])


# ----------------------------------------------------------------------------
# pallas_call wrappers
# ----------------------------------------------------------------------------
def attn_sublayer(x, kv, mask, gamma, beta, p, head, self_attention):
    # x:(B,Sq,D)  kv:(B,Sk,D)  mask:(B,Sq,Sk)   returns x + attn(LN(x))
    B, Sq, D = x.shape
    Sk = kv.shape[1]
    kernel = functools.partial(attn_sublayer_kernel, head=head,
                               self_attention=self_attention)
    return pl.pallas_call(
        kernel,
        grid=(B,),
        out_shape=jax.ShapeDtypeStruct((B, Sq, D), jnp.float32),
        in_specs=[
            pl.BlockSpec((None, Sq, D), lambda b: (b, 0, 0)),    # x (residual)
            pl.BlockSpec((None, Sk, D), lambda b: (b, 0, 0)),    # kv source
            pl.BlockSpec((None, Sq, Sk), lambda b: (b, 0, 0)),   # mask (1 DMA/batch)
            pl.BlockSpec((1, D), lambda b: (0, 0)),              # ln gamma
            pl.BlockSpec((1, D), lambda b: (0, 0)),              # ln beta
            pl.BlockSpec((D, D), lambda b: (0, 0)),              # wq (resident)
            pl.BlockSpec((1, D), lambda b: (0, 0)),              # bq
            pl.BlockSpec((D, 2 * D), lambda b: (0, 0)),          # fused wk|wv
            pl.BlockSpec((1, 2 * D), lambda b: (0, 0)),          # fused bk|bv
            pl.BlockSpec((D, D), lambda b: (0, 0)),              # wo
            pl.BlockSpec((1, D), lambda b: (0, 0)),              # bo
        ],
        out_specs=pl.BlockSpec((None, Sq, D), lambda b: (b, 0, 0)),
        compiler_params=_compiler_params(),
    )(x, kv, mask,
      gamma.reshape(1, D), beta.reshape(1, D),
      p["wq"].astype(MXU_DTYPE), p["bq"].reshape(1, D),
      p["wkv"].astype(MXU_DTYPE), p["bkv"].reshape(1, 2 * D),
      p["wo"].astype(MXU_DTYPE), p["bo"].reshape(1, D))


def ffn_sublayer(x, gamma, beta, p):
    # returns x + FFN(LN(x)), tiled over rows of (B*S, D)
    B, S, D = x.shape
    F = p["w1"].shape[1]
    M = B * S
    tm = _row_tile(M)
    out = pl.pallas_call(
        ffn_sublayer_kernel,
        grid=(M // tm,),
        out_shape=jax.ShapeDtypeStruct((M, D), jnp.float32),
        in_specs=[
            pl.BlockSpec((tm, D), lambda i: (i, 0)),
            pl.BlockSpec((1, D), lambda i: (0, 0)),
            pl.BlockSpec((1, D), lambda i: (0, 0)),
            pl.BlockSpec((D, F), lambda i: (0, 0)),
            pl.BlockSpec((1, F), lambda i: (0, 0)),
            pl.BlockSpec((F, D), lambda i: (0, 0)),
            pl.BlockSpec((1, D), lambda i: (0, 0)),
        ],
        out_specs=pl.BlockSpec((tm, D), lambda i: (i, 0)),
        compiler_params=_compiler_params(),
    )(x.reshape(M, D),
      gamma.reshape(1, D), beta.reshape(1, D),
      p["w1"].astype(MXU_DTYPE), p["b1"].reshape(1, F),
      p["w2"].astype(MXU_DTYPE), p["b2"].reshape(1, D))
    return out.reshape(B, S, D)


def layer_norm(x, gamma, beta):
    B, S, D = x.shape
    M = B * S
    tm = _row_tile(M)
    out = pl.pallas_call(
        layernorm_kernel,
        grid=(M // tm,),
        out_shape=jax.ShapeDtypeStruct((M, D), jnp.float32),
        in_specs=[
            pl.BlockSpec((tm, D), lambda i: (i, 0)),
            pl.BlockSpec((1, D), lambda i: (0, 0)),
            pl.BlockSpec((1, D), lambda i: (0, 0)),
        ],
        out_specs=pl.BlockSpec((tm, D), lambda i: (i, 0)),
        compiler_params=_compiler_params(),
    )(x.reshape(M, D), gamma.reshape(1, D), beta.reshape(1, D))
    return out.reshape(B, S, D)


# ----------------------------------------------------------------------------
# Transformer building blocks
# ----------------------------------------------------------------------------
def encoder_layer(p, x, mask, head):
    x = attn_sublayer(x, x, mask, p["ln0_g"], p["ln0_b"], p["self_attn"],
                      head, self_attention=True)
    x = ffn_sublayer(x, p["ln1_g"], p["ln1_b"], p["ff"])
    return x


def decoder_layer(p, x, memory, src_mask, tgt_mask, head):
    x = attn_sublayer(x, x, tgt_mask, p["ln0_g"], p["ln0_b"], p["self_attn"],
                      head, self_attention=True)
    x = attn_sublayer(x, memory, src_mask, p["ln1_g"], p["ln1_b"],
                      p["src_attn"], head, self_attention=False)
    x = ffn_sublayer(x, p["ln2_g"], p["ln2_b"], p["ff"])
    return x


def embed(tokens, table, pe):
    # Embedding gather + positional encoding in plain JAX (no rectangular
    # BlockSpec for an arbitrary gather); dropout = identity.
    D = table.shape[1]
    x = table[tokens] * math.sqrt(D)
    return x + pe[: tokens.shape[1]][None, :, :]


def encoder_decoder_forward(params, source, target, source_mask, target_mask,
                            head):
    # encode
    x = embed(source, params["src_emb"], params["pe"])
    for lp in params["enc_layers"]:
        x = encoder_layer(lp, x, source_mask, head)
    memory = layer_norm(x, params["enc_norm_g"], params["enc_norm_b"])
    # decode
    y = embed(target, params["tgt_emb"], params["pe"])
    for lp in params["dec_layers"]:
        y = decoder_layer(lp, y, memory, source_mask, target_mask, head)
    return layer_norm(y, params["dec_norm_g"], params["dec_norm_b"])
    # TODO(synk): Generator (log-softmax projection) exists in __init__ but is
    # not invoked in EncoderDecoder.forward, so it is intentionally omitted.


# ----------------------------------------------------------------------------
# Deterministic parameter initialization (xavier-uniform like make_model)
# ----------------------------------------------------------------------------
def _glorot(key, shape):
    fan_in, fan_out = shape
    limit = math.sqrt(6.0 / (fan_in + fan_out))
    return jax.random.uniform(key, shape, jnp.float32, -limit, limit)


def _init_mha(key, D):
    ks = jax.random.split(key, 4)
    wk = _glorot(ks[1], (D, D))
    wv = _glorot(ks[2], (D, D))
    return {
        "wq": _glorot(ks[0], (D, D)), "bq": jnp.zeros((D,), jnp.float32),
        "wkv": jnp.concatenate([wk, wv], axis=1),          # fused K|V weights
        "bkv": jnp.zeros((2 * D,), jnp.float32),
        "wo": _glorot(ks[3], (D, D)), "bo": jnp.zeros((D,), jnp.float32),
    }


def _init_ff(key, D, F):
    k1, k2 = jax.random.split(key)
    return {
        "w1": _glorot(k1, (D, F)), "b1": jnp.zeros((F,), jnp.float32),
        "w2": _glorot(k2, (F, D)), "b2": jnp.zeros((D,), jnp.float32),
    }


def _init_enc_layer(key, D, F):
    k1, k2 = jax.random.split(key)
    return {
        "self_attn": _init_mha(k1, D),
        "ff": _init_ff(k2, D, F),
        "ln0_g": jnp.ones((D,), jnp.float32), "ln0_b": jnp.zeros((D,), jnp.float32),
        "ln1_g": jnp.ones((D,), jnp.float32), "ln1_b": jnp.zeros((D,), jnp.float32),
    }


def _init_dec_layer(key, D, F):
    k1, k2, k3 = jax.random.split(key, 3)
    return {
        "self_attn": _init_mha(k1, D),
        "src_attn": _init_mha(k2, D),
        "ff": _init_ff(k3, D, F),
        "ln0_g": jnp.ones((D,), jnp.float32), "ln0_b": jnp.zeros((D,), jnp.float32),
        "ln1_g": jnp.ones((D,), jnp.float32), "ln1_b": jnp.zeros((D,), jnp.float32),
        "ln2_g": jnp.ones((D,), jnp.float32), "ln2_b": jnp.zeros((D,), jnp.float32),
    }


def _positional_encoding(max_len, D):
    position = jnp.arange(max_len, dtype=jnp.float32)[:, None]
    div_term = jnp.exp(
        jnp.arange(0, D, 2, dtype=jnp.float32) * -(math.log(10000.0) / D))
    pe = jnp.zeros((max_len, D), jnp.float32)
    pe = pe.at[:, 0::2].set(jnp.sin(position * div_term))
    pe = pe.at[:, 1::2].set(jnp.cos(position * div_term))
    return pe


def init_params(key, D, F, V, N, max_len=60):
    keys = jax.random.split(key, 2 * N + 2)
    return {
        "src_emb": _glorot(keys[0], (V, D)),
        "tgt_emb": _glorot(keys[1], (V, D)),
        "pe": _positional_encoding(max_len, D),
        "enc_layers": [_init_enc_layer(keys[2 + i], D, F) for i in range(N)],
        "dec_layers": [_init_dec_layer(keys[2 + N + i], D, F) for i in range(N)],
        "enc_norm_g": jnp.ones((D,), jnp.float32),
        "enc_norm_b": jnp.zeros((D,), jnp.float32),
        "dec_norm_g": jnp.ones((D,), jnp.float32),
        "dec_norm_b": jnp.zeros((D,), jnp.float32),
    }


# ----------------------------------------------------------------------------
if __name__ == "__main__":
    # Small shapes consistent with the module: batch=2, seq=4, d_model=32,
    # heads=4 (d_k=8), d_ff=64, vocab=11, N=2 layers.
    B, S, D, H, F, V, N = 2, 4, 32, 4, 64, 11, 2

    key = jax.random.PRNGKey(0)
    params = init_params(key, D, F, V, N)

    source = jnp.array([[1, 2, 4, 8], [9, 10, 1, 2]], dtype=jnp.int32)
    target = jnp.array([[3, 5, 7, 2], [6, 0, 9, 4]], dtype=jnp.int32)
    # Matches the reference script: source_mask = target_mask = torch.zeros(2,4,4)
    source_mask = jnp.zeros((B, S, S), jnp.float32)
    target_mask = jnp.zeros((B, S, S), jnp.float32)

    fwd = jax.jit(functools.partial(encoder_decoder_forward, head=H))
    out = fwd(params, source, target, source_mask, target_mask)
    out = jax.block_until_ready(out)

    assert out.shape == (B, S, D)
    assert bool(jnp.all(jnp.isfinite(out)))
    print("KERNEL_OK")
</pallas_src>

<mosaic_0001>
module attributes {stable_mosaic.version = 11 : i64} {
  func.func @attn_sublayer_kernel(%arg0: i32, %arg1: memref<1x4x32xf32, #tpu.memory_space<vmem>>, %arg2: memref<1x4x32xf32, #tpu.memory_space<vmem>>, %arg3: memref<1x4x4xf32, #tpu.memory_space<vmem>>, %arg4: memref<1x32xf32, #tpu.memory_space<vmem>>, %arg5: memref<1x32xf32, #tpu.memory_space<vmem>>, %arg6: memref<32x32xbf16, #tpu.memory_space<vmem>>, %arg7: memref<1x32xf32, #tpu.memory_space<vmem>>, %arg8: memref<32x64xbf16, #tpu.memory_space<vmem>>, %arg9: memref<1x64xf32, #tpu.memory_space<vmem>>, %arg10: memref<32x32xbf16, #tpu.memory_space<vmem>>, %arg11: memref<1x32xf32, #tpu.memory_space<vmem>>, %arg12: memref<1x4x32xf32, #tpu.memory_space<vmem>>) attributes {dimension_semantics = [#tpu.dimension_semantics<parallel>], iteration_bounds = array<i64: 2>, scalar_prefetch = 0 : i64, scratch_operands = 0 : i64, tpu.core_type = #tpu.core_type<tc>, window_params = [{transform_indices = @transform_0, window_bounds = array<i64: 1, 4, 32>}, {transform_indices = @transform_1, window_bounds = array<i64: 1, 4, 32>}, {transform_indices = @transform_2, window_bounds = array<i64: 1, 4, 4>}, {pipeline_mode = #tpu.pipeline_mode<synchronous>, transform_indices = @transform_3, window_bounds = array<i64: 1, 32>}, {pipeline_mode = #tpu.pipeline_mode<synchronous>, transform_indices = @transform_4, window_bounds = array<i64: 1, 32>}, {pipeline_mode = #tpu.pipeline_mode<synchronous>, transform_indices = @transform_5, window_bounds = array<i64: 32, 32>}, {pipeline_mode = #tpu.pipeline_mode<synchronous>, transform_indices = @transform_6, window_bounds = array<i64: 1, 32>}, {pipeline_mode = #tpu.pipeline_mode<synchronous>, transform_indices = @transform_7, window_bounds = array<i64: 32, 64>}, {pipeline_mode = #tpu.pipeline_mode<synchronous>, transform_indices = @transform_8, window_bounds = array<i64: 1, 64>}, {pipeline_mode = #tpu.pipeline_mode<synchronous>, transform_indices = @transform_9, window_bounds = array<i64: 32, 32>}, {pipeline_mode = #tpu.pipeline_mode<synchronous>, transform_indices = @transform_10, window_bounds = array<i64: 1, 32>}, {transform_indices = @transform_11, window_bounds = array<i64: 1, 4, 32>}]} {
    %c0 = arith.constant 0 : index
    %c0_0 = arith.constant 0 : index
    %c0_1 = arith.constant 0 : index
    %0 = vector.load %arg1[%c0, %c0_0, %c0_1] : memref<1x4x32xf32, #tpu.memory_space<vmem>>, vector<1x4x32xf32>
    %1 = vector.shape_cast %0 : vector<1x4x32xf32> to vector<4x32xf32>
    %c0_2 = arith.constant 0 : index
    %c0_3 = arith.constant 0 : index
    %2 = vector.load %arg4[%c0_2, %c0_3] : memref<1x32xf32, #tpu.memory_space<vmem>>, vector<1x32xf32>
    %c0_4 = arith.constant 0 : index
    %c0_5 = arith.constant 0 : index
    %3 = vector.load %arg5[%c0_4, %c0_5] : memref<1x32xf32, #tpu.memory_space<vmem>>, vector<1x32xf32>
    %cst = arith.constant dense<0.000000e+00> : vector<4xf32>
    %4 = vector.multi_reduction <add>, %1, %cst [1] : vector<4x32xf32> to vector<4xf32>
    %5 = vector.shape_cast %4 : vector<4xf32> to vector<4x1xf32>
    %cst_6 = arith.constant 3.200000e+01 : f32
    %6 = vector.broadcast %cst_6 : f32 to vector<4x1xf32>
    %7 = arith.divf %5, %6 : vector<4x1xf32>
    %8 = vector.broadcast %7 : vector<4x1xf32> to vector<4x32xf32>
    %9 = arith.subf %1, %8 : vector<4x32xf32>
    %10 = arith.mulf %9, %9 : vector<4x32xf32>
    %cst_7 = arith.constant dense<0.000000e+00> : vector<4xf32>
    %11 = vector.multi_reduction <add>, %10, %cst_7 [1] : vector<4x32xf32> to vector<4xf32>
    %12 = vector.shape_cast %11 : vector<4xf32> to vector<4x1xf32>
    %cst_8 = arith.constant 3.100000e+01 : f32
    %13 = vector.broadcast %cst_8 : f32 to vector<4x1xf32>
    %14 = arith.divf %12, %13 : vector<4x1xf32>
    %15 = vector.broadcast %2 : vector<1x32xf32> to vector<4x32xf32>
    %16 = arith.mulf %15, %9 : vector<4x32xf32>
    %17 = math.sqrt %14 : vector<4x1xf32>
    %cst_9 = arith.constant 9.99999997E-7 : f32
    %18 = vector.broadcast %cst_9 : f32 to vector<4x1xf32>
    %19 = arith.addf %17, %18 : vector<4x1xf32>
    %20 = vector.broadcast %19 : vector<4x1xf32> to vector<4x32xf32>
    %21 = arith.divf %16, %20 : vector<4x32xf32>
    %22 = vector.broadcast %3 : vector<1x32xf32> to vector<4x32xf32>
    %23 = arith.addf %21, %22 : vector<4x32xf32>
    %24 = arith.truncf %23 : vector<4x32xf32> to vector<4x32xbf16>
    %c0_10 = arith.constant 0 : index
    %c0_11 = arith.constant 0 : index
    %25 = vector.load %arg6[%c0_10, %c0_11] : memref<32x32xbf16, #tpu.memory_space<vmem>>, vector<32x32xbf16>
    %cst_12 = arith.constant dense<0.000000e+00> : vector<4x32xf32>
    %26 = tpu.matmul %24, %25, %cst_12 {dimension_numbers = #tpu.dot_dimension_numbers<[1], [0], [0], [1], [0, 0, 1, 1], [], []>} : vector<4x32xbf16>, vector<32x32xbf16>, vector<4x32xf32> -> vector<4x32xf32>
    %c0_13 = arith.constant 0 : index
    %c0_14 = arith.constant 0 : index
    %27 = vector.load %arg7[%c0_13, %c0_14] : memref<1x32xf32, #tpu.memory_space<vmem>>, vector<1x32xf32>
    %28 = vector.broadcast %27 : vector<1x32xf32> to vector<4x32xf32>
    %29 = arith.addf %26, %28 : vector<4x32xf32>
    %30 = arith.truncf %23 : vector<4x32xf32> to vector<4x32xbf16>
    %c0_15 = arith.constant 0 : index
    %c0_16 = arith.constant 0 : index
    %31 = vector.load %arg8[%c0_15, %c0_16] : memref<32x64xbf16, #tpu.memory_space<vmem>>, vector<32x64xbf16>
    %cst_17 = arith.constant dense<0.000000e+00> : vector<4x64xf32>
    %32 = tpu.matmul %30, %31, %cst_17 {dimension_numbers = #tpu.dot_dimension_numbers<[1], [0], [0], [1], [0, 0, 1, 1], [], []>} : vector<4x32xbf16>, vector<32x64xbf16>, vector<4x64xf32> -> vector<4x64xf32>
    %c0_18 = arith.constant 0 : index
    %c0_19 = arith.constant 0 : index
    %33 = vector.load %arg9[%c0_18, %c0_19] : memref<1x64xf32, #tpu.memory_space<vmem>>, vector<1x64xf32>
    %34 = vector.broadcast %33 : vector<1x64xf32> to vector<4x64xf32>
    %35 = arith.addf %32, %34 : vector<4x64xf32>
    %36 = vector.extract_strided_slice %35 {offsets = [0, 0], sizes = [4, 32], strides = [1, 1]} : vector<4x64xf32> to vector<4x32xf32>
    %37 = vector.extract_strided_slice %35 {offsets = [0, 32], sizes = [4, 32], strides = [1, 1]} : vector<4x64xf32> to vector<4x32xf32>
    %c0_20 = arith.constant 0 : index
    %c0_21 = arith.constant 0 : index
    %c0_22 = arith.constant 0 : index
    %38 = vector.load %arg3[%c0_20, %c0_21, %c0_22] : memref<1x4x4xf32, #tpu.memory_space<vmem>>, vector<1x4x4xf32>
    %39 = vector.shape_cast %38 : vector<1x4x4xf32> to vector<4x4xf32>
    %40 = vector.extract_strided_slice %29 {offsets = [0, 0], sizes = [4, 8], strides = [1, 1]} : vector<4x32xf32> to vector<4x8xf32>
    %41 = arith.truncf %40 : vector<4x8xf32> to vector<4x8xbf16>
    %42 = vector.extract_strided_slice %36 {offsets = [0, 0], sizes = [4, 8], strides = [1, 1]} : vector<4x32xf32> to vector<4x8xf32>
    %43 = arith.truncf %42 : vector<4x8xf32> to vector<4x8xbf16>
    %44 = vector.extract_strided_slice %37 {offsets = [0, 0], sizes = [4, 8], strides = [1, 1]} : vector<4x32xf32> to vector<4x8xf32>
    %45 = arith.truncf %44 : vector<4x8xf32> to vector<4x8xbf16>
    %cst_23 = arith.constant dense<0.000000e+00> : vector<4x4xf32>
    %46 = tpu.matmul %41, %43, %cst_23 {dimension_numbers = #tpu.dot_dimension_numbers<[1], [1], [0], [0], [0, 0, 1, 0], [], []>} : vector<4x8xbf16>, vector<4x8xbf16>, vector<4x4xf32> -> vector<4x4xf32>
    %cst_24 = arith.constant 0.353553385 : f32
    %47 = vector.broadcast %cst_24 : f32 to vector<4x4xf32>
    %48 = arith.mulf %46, %47 : vector<4x4xf32>
    %cst_25 = arith.constant 0.000000e+00 : f32
    %49 = vector.broadcast %cst_25 : f32 to vector<4x4xf32>
    %50 = arith.cmpf oeq, %39, %49 : vector<4x4xf32>
    %cst_26 = arith.constant -1.000000e+09 : f32
    %51 = vector.broadcast %cst_26 : f32 to vector<4x4xf32>
    %52 = arith.select %50, %51, %48 : vector<4x4xi1>, vector<4x4xf32>
    %cst_27 = arith.constant dense<0xFF800000> : vector<4xf32>
    %53 = vector.multi_reduction <maximumf>, %52, %cst_27 [1] : vector<4x4xf32> to vector<4xf32>
    %54 = vector.shape_cast %53 : vector<4xf32> to vector<4x1xf32>
    %55 = vector.broadcast %54 : vector<4x1xf32> to vector<4x4xf32>
    %56 = arith.subf %52, %55 : vector<4x4xf32>
    %57 = math.exp %56 : vector<4x4xf32>
    %cst_28 = arith.constant dense<0.000000e+00> : vector<4xf32>
    %58 = vector.multi_reduction <add>, %57, %cst_28 [1] : vector<4x4xf32> to vector<4xf32>
    %59 = vector.shape_cast %58 : vector<4xf32> to vector<4x1xf32>
    %60 = tpu.reciprocal %59 {approx = true} : vector<4x1xf32> -> vector<4x1xf32>
    %61 = vector.broadcast %60 : vector<4x1xf32> to vector<4x4xf32>
    %62 = arith.mulf %57, %61 : vector<4x4xf32>
    %63 = arith.truncf %62 : vector<4x4xf32> to vector<4x4xbf16>
    %cst_29 = arith.constant dense<0.000000e+00> : vector<4x8xf32>
    %64 = tpu.matmul %63, %45, %cst_29 {dimension_numbers = #tpu.dot_dimension_numbers<[1], [0], [0], [1], [0, 0, 1, 1], [], []>} : vector<4x4xbf16>, vector<4x8xbf16>, vector<4x8xf32> -> vector<4x8xf32>
    %65 = vector.extract_strided_slice %29 {offsets = [0, 8], sizes = [4, 8], strides = [1, 1]} : vector<4x32xf32> to vector<4x8xf32>
    %66 = arith.truncf %65 : vector<4x8xf32> to vector<4x8xbf16>
    %67 = vector.extract_strided_slice %36 {offsets = [0, 8], sizes = [4, 8], strides = [1, 1]} : vector<4x32xf32> to vector<4x8xf32>
    %68 = arith.truncf %67 : vector<4x8xf32> to vector<4x8xbf16>
    %69 = vector.extract_strided_slice %37 {offsets = [0, 8], sizes = [4, 8], strides = [1, 1]} : vector<4x32xf32> to vector<4x8xf32>
    %70 = arith.truncf %69 : vector<4x8xf32> to vector<4x8xbf16>
    %cst_30 = arith.constant dense<0.000000e+00> : vector<4x4xf32>
    %71 = tpu.matmul %66, %68, %cst_30 {dimension_numbers = #tpu.dot_dimension_numbers<[1], [1], [0], [0], [0, 0, 1, 0], [], []>} : vector<4x8xbf16>, vector<4x8xbf16>, vector<4x4xf32> -> vector<4x4xf32>
    %cst_31 = arith.constant 0.353553385 : f32
    %72 = vector.broadcast %cst_31 : f32 to vector<4x4xf32>
    %73 = arith.mulf %71, %72 : vector<4x4xf32>
    %cst_32 = arith.constant 0.000000e+00 : f32
    %74 = vector.broadcast %cst_32 : f32 to vector<4x4xf32>
    %75 = arith.cmpf oeq, %39, %74 : vector<4x4xf32>
    %cst_33 = arith.constant -1.000000e+09 : f32
    %76 = vector.broadcast %cst_33 : f32 to vector<4x4xf32>
    %77 = arith.select %75, %76, %73 : vector<4x4xi1>, vector<4x4xf32>
    %cst_34 = arith.constant dense<0xFF800000> : vector<4xf32>
    %78 = vector.multi_reduction <maximumf>, %77, %cst_34 [1] : vector<4x4xf32> to vector<4xf32>
    %79 = vector.shape_cast %78 : vector<4xf32> to vector<4x1xf32>
    %80 = vector.broadcast %79 : vector<4x1xf32> to vector<4x4xf32>
    %81 = arith.subf %77, %80 : vector<4x4xf32>
    %82 = math.exp %81 : vector<4x4xf32>
    %cst_35 = arith.constant dense<0.000000e+00> : vector<4xf32>
    %83 = vector.multi_reduction <add>, %82, %cst_35 [1] : vector<4x4xf32> to vector<4xf32>
    %84 = vector.shape_cast %83 : vector<4xf32> to vector<4x1xf32>
    %85 = tpu.reciprocal %84 {approx = true} : vector<4x1xf32> -> vector<4x1xf32>
    %86 = vector.broadcast %85 : vector<4x1xf32> to vector<4x4xf32>
    %87 = arith.mulf %82, %86 : vector<4x4xf32>
    %88 = arith.truncf %87 : vector<4x4xf32> to vector<4x4xbf16>
    %cst_36 = arith.constant dense<0.000000e+00> : vector<4x8xf32>
    %89 = tpu.matmul %88, %70, %cst_36 {dimension_numbers = #tpu.dot_dimension_numbers<[1], [0], [0], [1], [0, 0, 1, 1], [], []>} : vector<4x4xbf16>, vector<4x8xbf16>, vector<4x8xf32> -> vector<4x8xf32>
    %90 = vector.extract_strided_slice %29 {offsets = [0, 16], sizes = [4, 8], strides = [1, 1]} : vector<4x32xf32> to vector<4x8xf32>
    %91 = arith.truncf %90 : vector<4x8xf32> to vector<4x8xbf16>
    %92 = vector.extract_strided_slice %36 {offsets = [0, 16], sizes = [4, 8], strides = [1, 1]} : vector<4x32xf32> to vector<4x8xf32>
    %93 = arith.truncf %92 : vector<4x8xf32> to vector<4x8xbf16>
    %94 = vector.extract_strided_slice %37 {offsets = [0, 16], sizes = [4, 8], strides = [1, 1]} : vector<4x32xf32> to vector<4x8xf32>
    %95 = arith.truncf %94 : vector<4x8xf32> to vector<4x8xbf16>
    %cst_37 = arith.constant dense<0.000000e+00> : vector<4x4xf32>
    %96 = tpu.matmul %91, %93, %cst_37 {dimension_numbers = #tpu.dot_dimension_numbers<[1], [1], [0], [0], [0, 0, 1, 0], [], []>} : vector<4x8xbf16>, vector<4x8xbf16>, vector<4x4xf32> -> vector<4x4xf32>
    %cst_38 = arith.constant 0.353553385 : f32
    %97 = vector.broadcast %cst_38 : f32 to vector<4x4xf32>
    %98 = arith.mulf %96, %97 : vector<4x4xf32>
    %cst_39 = arith.constant 0.000000e+00 : f32
    %99 = vector.broadcast %cst_39 : f32 to vector<4x4xf32>
    %100 = arith.cmpf oeq, %39, %99 : vector<4x4xf32>
    %cst_40 = arith.constant -1.000000e+09 : f32
    %101 = vector.broadcast %cst_40 : f32 to vector<4x4xf32>
    %102 = arith.select %100, %101, %98 : vector<4x4xi1>, vector<4x4xf32>
    %cst_41 = arith.constant dense<0xFF800000> : vector<4xf32>
    %103 = vector.multi_reduction <maximumf>, %102, %cst_41 [1] : vector<4x4xf32> to vector<4xf32>
    %104 = vector.shape_cast %103 : vector<4xf32> to vector<4x1xf32>
    %105 = vector.broadcast %104 : vector<4x1xf32> to vector<4x4xf32>
    %106 = arith.subf %102, %105 : vector<4x4xf32>
    %107 = math.exp %106 : vector<4x4xf32>
    %cst_42 = arith.constant dense<0.000000e+00> : vector<4xf32>
    %108 = vector.multi_reduction <add>, %107, %cst_42 [1] : vector<4x4xf32> to vector<4xf32>
    %109 = vector.shape_cast %108 : vector<4xf32> to vector<4x1xf32>
    %110 = tpu.reciprocal %109 {approx = true} : vector<4x1xf32> -> vector<4x1xf32>
    %111 = vector.broadcast %110 : vector<4x1xf32> to vector<4x4xf32>
    %112 = arith.mulf %107, %111 : vector<4x4xf32>
    %113 = arith.truncf %112 : vector<4x4xf32> to vector<4x4xbf16>
    %cst_43 = arith.constant dense<0.000000e+00> : vector<4x8xf32>
    %114 = tpu.matmul %113, %95, %cst_43 {dimension_numbers = #tpu.dot_dimension_numbers<[1], [0], [0], [1], [0, 0, 1, 1], [], []>} : vector<4x4xbf16>, vector<4x8xbf16>, vector<4x8xf32> -> vector<4x8xf32>
    %115 = vector.extract_strided_slice %29 {offsets = [0, 24], sizes = [4, 8], strides = [1, 1]} : vector<4x32xf32> to vector<4x8xf32>
    %116 = arith.truncf %115 : vector<4x8xf32> to vector<4x8xbf16>
    %117 = vector.extract_strided_slice %36 {offsets = [0, 24], sizes = [4, 8], strides = [1, 1]} : vector<4x32xf32> to vector<4x8xf32>
    %118 = arith.truncf %117 : vector<4x8xf32> to vector<4x8xbf16>
    %119 = vector.extract_strided_slice %37 {offsets = [0, 24], sizes = [4, 8], strides = [1, 1]} : vector<4x32xf32> to vector<4x8xf32>
    %120 = arith.truncf %119 : vector<4x8xf32> to vector<4x8xbf16>
    %cst_44 = arith.constant dense<0.000000e+00> : vector<4x4xf32>
    %121 = tpu.matmul %116, %118, %cst_44 {dimension_numbers = #tpu.dot_dimension_numbers<[1], [1], [0], [0], [0, 0, 1, 0], [], []>} : vector<4x8xbf16>, vector<4x8xbf16>, vector<4x4xf32> -> vector<4x4xf32>
    %cst_45 = arith.constant 0.353553385 : f32
    %122 = vector.broadcast %cst_45 : f32 to vector<4x4xf32>
    %123 = arith.mulf %121, %122 : vector<4x4xf32>
    %cst_46 = arith.constant 0.000000e+00 : f32
    %124 = vector.broadcast %cst_46 : f32 to vector<4x4xf32>
    %125 = arith.cmpf oeq, %39, %124 : vector<4x4xf32>
    %cst_47 = arith.constant -1.000000e+09 : f32
    %126 = vector.broadcast %cst_47 : f32 to vector<4x4xf32>
    %127 = arith.select %125, %126, %123 : vector<4x4xi1>, vector<4x4xf32>
    %cst_48 = arith.constant dense<0xFF800000> : vector<4xf32>
    %128 = vector.multi_reduction <maximumf>, %127, %cst_48 [1] : vector<4x4xf32> to vector<4xf32>
    %129 = vector.shape_cast %128 : vector<4xf32> to vector<4x1xf32>
    %130 = vector.broadcast %129 : vector<4x1xf32> to vector<4x4xf32>
    %131 = arith.subf %127, %130 : vector<4x4xf32>
    %132 = math.exp %131 : vector<4x4xf32>
    %cst_49 = arith.constant dense<0.000000e+00> : vector<4xf32>
    %133 = vector.multi_reduction <add>, %132, %cst_49 [1] : vector<4x4xf32> to vector<4xf32>
    %134 = vector.shape_cast %133 : vector<4xf32> to vector<4x1xf32>
    %135 = tpu.reciprocal %134 {approx = true} : vector<4x1xf32> -> vector<4x1xf32>
    %136 = vector.broadcast %135 : vector<4x1xf32> to vector<4x4xf32>
    %137 = arith.mulf %132, %136 : vector<4x4xf32>
    %138 = arith.truncf %137 : vector<4x4xf32> to vector<4x4xbf16>
    %cst_50 = arith.constant dense<0.000000e+00> : vector<4x8xf32>
    %139 = tpu.matmul %138, %120, %cst_50 {dimension_numbers = #tpu.dot_dimension_numbers<[1], [0], [0], [1], [0, 0, 1, 1], [], []>} : vector<4x4xbf16>, vector<4x8xbf16>, vector<4x8xf32> -> vector<4x8xf32>
    %140 = tpu.concatenate %64, %89, %114, %139 in 1 : vector<4x8xf32>, vector<4x8xf32>, vector<4x8xf32>, vector<4x8xf32> -> vector<4x32xf32>
    %141 = arith.truncf %140 : vector<4x32xf32> to vector<4x32xbf16>
    %c0_51 = arith.constant 0 : index
    %c0_52 = arith.constant 0 : index
    %142 = vector.load %arg10[%c0_51, %c0_52] : memref<32x32xbf16, #tpu.memory_space<vmem>>, vector<32x32xbf16>
    %cst_53 = arith.constant dense<0.000000e+00> : vector<4x32xf32>
    %143 = tpu.matmul %141, %142, %cst_53 {dimension_numbers = #tpu.dot_dimension_numbers<[1], [0], [0], [1], [0, 0, 1, 1], [], []>} : vector<4x32xbf16>, vector<32x32xbf16>, vector<4x32xf32> -> vector<4x32xf32>
    %c0_54 = arith.constant 0 : index
    %c0_55 = arith.constant 0 : index
    %144 = vector.load %arg11[%c0_54, %c0_55] : memref<1x32xf32, #tpu.memory_space<vmem>>, vector<1x32xf32>
    %145 = vector.broadcast %144 : vector<1x32xf32> to vector<4x32xf32>
    %146 = arith.addf %143, %145 : vector<4x32xf32>
    %147 = arith.addf %1, %146 : vector<4x32xf32>
    %c0_56 = arith.constant 0 : index
    %c0_57 = arith.constant 0 : index
    %c0_58 = arith.constant 0 : index
    %148 = vector.load %arg12[%c0_56, %c0_57, %c0_58] : memref<1x4x32xf32, #tpu.memory_space<vmem>>, vector<1x4x32xf32>
    %149 = vector.shape_cast %148 : vector<1x4x32xf32> to vector<4x32xf32>
    %150 = vector.shape_cast %147 : vector<4x32xf32> to vector<1x4x32xf32>
    tpu.vector_store %arg12[%c0_56, %c0_57, %c0_58], %150 {strides = array<i32>} : memref<1x4x32xf32, #tpu.memory_space<vmem>>, vector<1x4x32xf32>,
    return
  }
  func.func @transform_0(%arg0: i32) -> (i32, i32, i32) {
    %c0_i32 = arith.constant 0 : i32
    %c0_i32_0 = arith.constant 0 : i32
    %c0_i32_1 = arith.constant 0 : i32
    return %arg0, %c0_i32, %c0_i32_0 : i32, i32, i32
  }
  func.func @transform_1(%arg0: i32) -> (i32, i32, i32) {
    %c0_i32 = arith.constant 0 : i32
    %c0_i32_0 = arith.constant 0 : i32
    %c0_i32_1 = arith.constant 0 : i32
    return %arg0, %c0_i32, %c0_i32_0 : i32, i32, i32
  }
  func.func @transform_2(%arg0: i32) -> (i32, i32, i32) {
    %c0_i32 = arith.constant 0 : i32
    %c0_i32_0 = arith.constant 0 : i32
    %c0_i32_1 = arith.constant 0 : i32
    return %arg0, %c0_i32, %c0_i32_0 : i32, i32, i32
  }
  func.func @transform_3(%arg0: i32) -> (i32, i32) {
    %c0_i32 = arith.constant 0 : i32
    %c0_i32_0 = arith.constant 0 : i32
    %c0_i32_1 = arith.constant 0 : i32
    return %c0_i32, %c0_i32_0 : i32, i32
  }
  func.func @transform_4(%arg0: i32) -> (i32, i32) {
    %c0_i32 = arith.constant 0 : i32
    %c0_i32_0 = arith.constant 0 : i32
    %c0_i32_1 = arith.constant 0 : i32
    return %c0_i32, %c0_i32_0 : i32, i32
  }
  func.func @transform_5(%arg0: i32) -> (i32, i32) {
    %c0_i32 = arith.constant 0 : i32
    %c0_i32_0 = arith.constant 0 : i32
    %c0_i32_1 = arith.constant 0 : i32
    return %c0_i32, %c0_i32_0 : i32, i32
  }
  func.func @transform_6(%arg0: i32) -> (i32, i32) {
    %c0_i32 = arith.constant 0 : i32
    %c0_i32_0 = arith.constant 0 : i32
    %c0_i32_1 = arith.constant 0 : i32
    return %c0_i32, %c0_i32_0 : i32, i32
  }
  func.func @transform_7(%arg0: i32) -> (i32, i32) {
    %c0_i32 = arith.constant 0 : i32
    %c0_i32_0 = arith.constant 0 : i32
    %c0_i32_1 = arith.constant 0 : i32
    return %c0_i32, %c0_i32_0 : i32, i32
  }
  func.func @transform_8(%arg0: i32) -> (i32, i32) {
    %c0_i32 = arith.constant 0 : i32
    %c0_i32_0 = arith.constant 0 : i32
    %c0_i32_1 = arith.constant 0 : i32
    return %c0_i32, %c0_i32_0 : i32, i32
  }
  func.func @transform_9(%arg0: i32) -> (i32, i32) {
    %c0_i32 = arith.constant 0 : i32
    %c0_i32_0 = arith.constant 0 : i32
    %c0_i32_1 = arith.constant 0 : i32
    return %c0_i32, %c0_i32_0 : i32, i32
  }
  func.func @transform_10(%arg0: i32) -> (i32, i32) {
    %c0_i32 = arith.constant 0 : i32
    %c0_i32_0 = arith.constant 0 : i32
    %c0_i32_1 = arith.constant 0 : i32
    return %c0_i32, %c0_i32_0 : i32, i32
  }
  func.func @transform_11(%arg0: i32) -> (i32, i32, i32) {
    %c0_i32 = arith.constant 0 : i32
    %c0_i32_0 = arith.constant 0 : i32
    %c0_i32_1 = arith.constant 0 : i32
    return %arg0, %c0_i32, %c0_i32_0 : i32, i32, i32
  }
}

module attributes {stable_mosaic.version = 11 : i64} {
  func.func @layernorm_kernel(%arg0: i32, %arg1: memref<8x32xf32, #tpu.memory_space<vmem>>, %arg2: memref<1x32xf32, #tpu.memory_space<vmem>>, %arg3: memref<1x32xf32, #tpu.memory_space<vmem>>, %arg4: memref<8x32xf32, #tpu.memory_space<vmem>>) attributes {dimension_semantics = [#tpu.dimension_semantics<parallel>], iteration_bounds = array<i64: 1>, scalar_prefetch = 0 : i64, scratch_operands = 0 : i64, tpu.core_type = #tpu.core_type<tc>, window_params = [{transform_indices = @transform_0, window_bounds = array<i64: 8, 32>}, {pipeline_mode = #tpu.pipeline_mode<synchronous>, transform_indices = @transform_1, window_bounds = array<i64: 1, 32>}, {pipeline_mode = #tpu.pipeline_mode<synchronous>, transform_indices = @transform_2, window_bounds = array<i64: 1, 32>}, {transform_indices = @transform_3, window_bounds = array<i64: 8, 32>}]} {
    %c0 = arith.constant 0 : index
    %c0_0 = arith.constant 0 : index
    %0 = vector.load %arg1[%c0, %c0_0] : memref<8x32xf32, #tpu.memory_space<vmem>>, vector<8x32xf32>
    %c0_1 = arith.constant 0 : index
    %c0_2 = arith.constant 0 : index
    %1 = vector.load %arg2[%c0_1, %c0_2] : memref<1x32xf32, #tpu.memory_space<vmem>>, vector<1x32xf32>
    %c0_3 = arith.constant 0 : index
    %c0_4 = arith.constant 0 : index
    %2 = vector.load %arg3[%c0_3, %c0_4] : memref<1x32xf32, #tpu.memory_space<vmem>>, vector<1x32xf32>
    %cst = arith.constant dense<0.000000e+00> : vector<8xf32>
    %3 = vector.multi_reduction <add>, %0, %cst [1] : vector<8x32xf32> to vector<8xf32>
    %4 = vector.shape_cast %3 : vector<8xf32> to vector<8x1xf32>
    %cst_5 = arith.constant 3.200000e+01 : f32
    %5 = vector.broadcast %cst_5 : f32 to vector<8x1xf32>
    %6 = arith.divf %4, %5 : vector<8x1xf32>
    %7 = vector.broadcast %6 : vector<8x1xf32> to vector<8x32xf32>
    %8 = arith.subf %0, %7 : vector<8x32xf32>
    %9 = arith.mulf %8, %8 : vector<8x32xf32>
    %cst_6 = arith.constant dense<0.000000e+00> : vector<8xf32>
    %10 = vector.multi_reduction <add>, %9, %cst_6 [1] : vector<8x32xf32> to vector<8xf32>
    %11 = vector.shape_cast %10 : vector<8xf32> to vector<8x1xf32>
    %cst_7 = arith.constant 3.100000e+01 : f32
    %12 = vector.broadcast %cst_7 : f32 to vector<8x1xf32>
    %13 = arith.divf %11, %12 : vector<8x1xf32>
    %14 = vector.broadcast %1 : vector<1x32xf32> to vector<8x32xf32>
    %15 = arith.mulf %14, %8 : vector<8x32xf32>
    %16 = math.sqrt %13 : vector<8x1xf32>
    %cst_8 = arith.constant 9.99999997E-7 : f32
    %17 = vector.broadcast %cst_8 : f32 to vector<8x1xf32>
    %18 = arith.addf %16, %17 : vector<8x1xf32>
    %19 = vector.broadcast %18 : vector<8x1xf32> to vector<8x32xf32>
    %20 = arith.divf %15, %19 : vector<8x32xf32>
    %21 = vector.broadcast %2 : vector<1x32xf32> to vector<8x32xf32>
    %22 = arith.addf %20, %21 : vector<8x32xf32>
    %c0_9 = arith.constant 0 : index
    %c0_10 = arith.constant 0 : index
    %23 = vector.load %arg4[%c0_9, %c0_10] : memref<8x32xf32, #tpu.memory_space<vmem>>, vector<8x32xf32>
    tpu.vector_store %arg4[%c0_9, %c0_10], %22 {strides = array<i32>} : memref<8x32xf32, #tpu.memory_space<vmem>>, vector<8x32xf32>,
    return
  }
  func.func @transform_0(%arg0: i32) -> (i32, i32) {
    %c0_i32 = arith.constant 0 : i32
    %c0_i32_0 = arith.constant 0 : i32
    return %arg0, %c0_i32 : i32, i32
  }
  func.func @transform_1(%arg0: i32) -> (i32, i32) {
    %c0_i32 = arith.constant 0 : i32
    %c0_i32_0 = arith.constant 0 : i32
    %c0_i32_1 = arith.constant 0 : i32
    return %c0_i32, %c0_i32_0 : i32, i32
  }
  func.func @transform_2(%arg0: i32) -> (i32, i32) {
    %c0_i32 = arith.constant 0 : i32
    %c0_i32_0 = arith.constant 0 : i32
    %c0_i32_1 = arith.constant 0 : i32
    return %c0_i32, %c0_i32_0 : i32, i32
  }
  func.func @transform_3(%arg0: i32) -> (i32, i32) {
    %c0_i32 = arith.constant 0 : i32
    %c0_i32_0 = arith.constant 0 : i32
    return %arg0, %c0_i32 : i32, i32
  }
}

module attributes {stable_mosaic.version = 11 : i64} {
  func.func @ffn_sublayer_kernel(%arg0: i32, %arg1: memref<8x32xf32, #tpu.memory_space<vmem>>, %arg2: memref<1x32xf32, #tpu.memory_space<vmem>>, %arg3: memref<1x32xf32, #tpu.memory_space<vmem>>, %arg4: memref<32x64xbf16, #tpu.memory_space<vmem>>, %arg5: memref<1x64xf32, #tpu.memory_space<vmem>>, %arg6: memref<64x32xbf16, #tpu.memory_space<vmem>>, %arg7: memref<1x32xf32, #tpu.memory_space<vmem>>, %arg8: memref<8x32xf32, #tpu.memory_space<vmem>>) attributes {dimension_semantics = [#tpu.dimension_semantics<parallel>], iteration_bounds = array<i64: 1>, scalar_prefetch = 0 : i64, scratch_operands = 0 : i64, tpu.core_type = #tpu.core_type<tc>, window_params = [{transform_indices = @transform_0, window_bounds = array<i64: 8, 32>}, {pipeline_mode = #tpu.pipeline_mode<synchronous>, transform_indices = @transform_1, window_bounds = array<i64: 1, 32>}, {pipeline_mode = #tpu.pipeline_mode<synchronous>, transform_indices = @transform_2, window_bounds = array<i64: 1, 32>}, {pipeline_mode = #tpu.pipeline_mode<synchronous>, transform_indices = @transform_3, window_bounds = array<i64: 32, 64>}, {pipeline_mode = #tpu.pipeline_mode<synchronous>, transform_indices = @transform_4, window_bounds = array<i64: 1, 64>}, {pipeline_mode = #tpu.pipeline_mode<synchronous>, transform_indices = @transform_5, window_bounds = array<i64: 64, 32>}, {pipeline_mode = #tpu.pipeline_mode<synchronous>, transform_indices = @transform_6, window_bounds = array<i64: 1, 32>}, {transform_indices = @transform_7, window_bounds = array<i64: 8, 32>}]} {
    %c0 = arith.constant 0 : index
    %c0_0 = arith.constant 0 : index
    %0 = vector.load %arg1[%c0, %c0_0] : memref<8x32xf32, #tpu.memory_space<vmem>>, vector<8x32xf32>
    %c0_1 = arith.constant 0 : index
    %c0_2 = arith.constant 0 : index
    %1 = vector.load %arg2[%c0_1, %c0_2] : memref<1x32xf32, #tpu.memory_space<vmem>>, vector<1x32xf32>
    %c0_3 = arith.constant 0 : index
    %c0_4 = arith.constant 0 : index
    %2 = vector.load %arg3[%c0_3, %c0_4] : memref<1x32xf32, #tpu.memory_space<vmem>>, vector<1x32xf32>
    %cst = arith.constant dense<0.000000e+00> : vector<8xf32>
    %3 = vector.multi_reduction <add>, %0, %cst [1] : vector<8x32xf32> to vector<8xf32>
    %4 = vector.shape_cast %3 : vector<8xf32> to vector<8x1xf32>
    %cst_5 = arith.constant 3.200000e+01 : f32
    %5 = vector.broadcast %cst_5 : f32 to vector<8x1xf32>
    %6 = arith.divf %4, %5 : vector<8x1xf32>
    %7 = vector.broadcast %6 : vector<8x1xf32> to vector<8x32xf32>
    %8 = arith.subf %0, %7 : vector<8x32xf32>
    %9 = arith.mulf %8, %8 : vector<8x32xf32>
    %cst_6 = arith.constant dense<0.000000e+00> : vector<8xf32>
    %10 = vector.multi_reduction <add>, %9, %cst_6 [1] : vector<8x32xf32> to vector<8xf32>
    %11 = vector.shape_cast %10 : vector<8xf32> to vector<8x1xf32>
    %cst_7 = arith.constant 3.100000e+01 : f32
    %12 = vector.broadcast %cst_7 : f32 to vector<8x1xf32>
    %13 = arith.divf %11, %12 : vector<8x1xf32>
    %14 = vector.broadcast %1 : vector<1x32xf32> to vector<8x32xf32>
    %15 = arith.mulf %14, %8 : vector<8x32xf32>
    %16 = math.sqrt %13 : vector<8x1xf32>
    %cst_8 = arith.constant 9.99999997E-7 : f32
    %17 = vector.broadcast %cst_8 : f32 to vector<8x1xf32>
    %18 = arith.addf %16, %17 : vector<8x1xf32>
    %19 = vector.broadcast %18 : vector<8x1xf32> to vector<8x32xf32>
    %20 = arith.divf %15, %19 : vector<8x32xf32>
    %21 = vector.broadcast %2 : vector<1x32xf32> to vector<8x32xf32>
    %22 = arith.addf %20, %21 : vector<8x32xf32>
    %23 = arith.truncf %22 : vector<8x32xf32> to vector<8x32xbf16>
    %c0_9 = arith.constant 0 : index
    %c0_10 = arith.constant 0 : index
    %24 = vector.load %arg4[%c0_9, %c0_10] : memref<32x64xbf16, #tpu.memory_space<vmem>>, vector<32x64xbf16>
    %cst_11 = arith.constant dense<0.000000e+00> : vector<8x64xf32>
    %25 = tpu.matmul %23, %24, %cst_11 {dimension_numbers = #tpu.dot_dimension_numbers<[1], [0], [0], [1], [0, 0, 1, 1], [], []>} : vector<8x32xbf16>, vector<32x64xbf16>, vector<8x64xf32> -> vector<8x64xf32>
    %c0_12 = arith.constant 0 : index
    %c0_13 = arith.constant 0 : index
    %26 = vector.load %arg5[%c0_12, %c0_13] : memref<1x64xf32, #tpu.memory_space<vmem>>, vector<1x64xf32>
    %27 = vector.broadcast %26 : vector<1x64xf32> to vector<8x64xf32>
    %28 = arith.addf %25, %27 : vector<8x64xf32>
    %cst_14 = arith.constant 0.000000e+00 : f32
    %29 = vector.broadcast %cst_14 : f32 to vector<8x64xf32>
    %30 = arith.maximumf %28, %29 : vector<8x64xf32>
    %31 = arith.truncf %30 : vector<8x64xf32> to vector<8x64xbf16>
    %c0_15 = arith.constant 0 : index
    %c0_16 = arith.constant 0 : index
    %32 = vector.load %arg6[%c0_15, %c0_16] : memref<64x32xbf16, #tpu.memory_space<vmem>>, vector<64x32xbf16>
    %cst_17 = arith.constant dense<0.000000e+00> : vector<8x32xf32>
    %33 = tpu.matmul %31, %32, %cst_17 {dimension_numbers = #tpu.dot_dimension_numbers<[1], [0], [0], [1], [0, 0, 1, 1], [], []>} : vector<8x64xbf16>, vector<64x32xbf16>, vector<8x32xf32> -> vector<8x32xf32>
    %c0_18 = arith.constant 0 : index
    %c0_19 = arith.constant 0 : index
    %34 = vector.load %arg7[%c0_18, %c0_19] : memref<1x32xf32, #tpu.memory_space<vmem>>, vector<1x32xf32>
    %35 = vector.broadcast %34 : vector<1x32xf32> to vector<8x32xf32>
    %36 = arith.addf %33, %35 : vector<8x32xf32>
    %37 = arith.addf %0, %36 : vector<8x32xf32>
    %c0_20 = arith.constant 0 : index
    %c0_21 = arith.constant 0 : index
    %38 = vector.load %arg8[%c0_20, %c0_21] : memref<8x32xf32, #tpu.memory_space<vmem>>, vector<8x32xf32>
    tpu.vector_store %arg8[%c0_20, %c0_21], %37 {strides = array<i32>} : memref<8x32xf32, #tpu.memory_space<vmem>>, vector<8x32xf32>,
    return
  }
  func.func @transform_0(%arg0: i32) -> (i32, i32) {
    %c0_i32 = arith.constant 0 : i32
    %c0_i32_0 = arith.constant 0 : i32
    return %arg0, %c0_i32 : i32, i32
  }
  func.func @transform_1(%arg0: i32) -> (i32, i32) {
    %c0_i32 = arith.constant 0 : i32
    %c0_i32_0 = arith.constant 0 : i32
    %c0_i32_1 = arith.constant 0 : i32
    return %c0_i32, %c0_i32_0 : i32, i32
  }
  func.func @transform_2(%arg0: i32) -> (i32, i32) {
    %c0_i32 = arith.constant 0 : i32
    %c0_i32_0 = arith.constant 0 : i32
    %c0_i32_1 = arith.constant 0 : i32
    return %c0_i32, %c0_i32_0 : i32, i32
  }
  func.func @transform_3(%arg0: i32) -> (i32, i32) {
    %c0_i32 = arith.constant 0 : i32
    %c0_i32_0 = arith.constant 0 : i32
    %c0_i32_1 = arith.constant 0 : i32
    return %c0_i32, %c0_i32_0 : i32, i32
  }
  func.func @transform_4(%arg0: i32) -> (i32, i32) {
    %c0_i32 = arith.constant 0 : i32
    %c0_i32_0 = arith.constant 0 : i32
    %c0_i32_1 = arith.constant 0 : i32
    return %c0_i32, %c0_i32_0 : i32, i32
  }
  func.func @transform_5(%arg0: i32) -> (i32, i32) {
    %c0_i32 = arith.constant 0 : i32
    %c0_i32_0 = arith.constant 0 : i32
    %c0_i32_1 = arith.constant 0 : i32
    return %c0_i32, %c0_i32_0 : i32, i32
  }
  func.func @transform_6(%arg0: i32) -> (i32, i32) {
    %c0_i32 = arith.constant 0 : i32
    %c0_i32_0 = arith.constant 0 : i32
    %c0_i32_1 = arith.constant 0 : i32
    return %c0_i32, %c0_i32_0 : i32, i32
  }
  func.func @transform_7(%arg0: i32) -> (i32, i32) {
    %c0_i32 = arith.constant 0 : i32
    %c0_i32_0 = arith.constant 0 : i32
    return %arg0, %c0_i32 : i32, i32
  }
}

module attributes {stable_mosaic.version = 11 : i64} {
  func.func @attn_sublayer_kernel(%arg0: i32, %arg1: memref<1x4x32xf32, #tpu.memory_space<vmem>>, %arg2: memref<1x4x32xf32, #tpu.memory_space<vmem>>, %arg3: memref<1x4x4xf32, #tpu.memory_space<vmem>>, %arg4: memref<1x32xf32, #tpu.memory_space<vmem>>, %arg5: memref<1x32xf32, #tpu.memory_space<vmem>>, %arg6: memref<32x32xbf16, #tpu.memory_space<vmem>>, %arg7: memref<1x32xf32, #tpu.memory_space<vmem>>, %arg8: memref<32x64xbf16, #tpu.memory_space<vmem>>, %arg9: memref<1x64xf32, #tpu.memory_space<vmem>>, %arg10: memref<32x32xbf16, #tpu.memory_space<vmem>>, %arg11: memref<1x32xf32, #tpu.memory_space<vmem>>, %arg12: memref<1x4x32xf32, #tpu.memory_space<vmem>>) attributes {dimension_semantics = [#tpu.dimension_semantics<parallel>], iteration_bounds = array<i64: 2>, scalar_prefetch = 0 : i64, scratch_operands = 0 : i64, tpu.core_type = #tpu.core_type<tc>, window_params = [{transform_indices = @transform_0, window_bounds = array<i64: 1, 4, 32>}, {transform_indices = @transform_1, window_bounds = array<i64: 1, 4, 32>}, {transform_indices = @transform_2, window_bounds = array<i64: 1, 4, 4>}, {pipeline_mode = #tpu.pipeline_mode<synchronous>, transform_indices = @transform_3, window_bounds = array<i64: 1, 32>}, {pipeline_mode = #tpu.pipeline_mode<synchronous>, transform_indices = @transform_4, window_bounds = array<i64: 1, 32>}, {pipeline_mode = #tpu.pipeline_mode<synchronous>, transform_indices = @transform_5, window_bounds = array<i64: 32, 32>}, {pipeline_mode = #tpu.pipeline_mode<synchronous>, transform_indices = @transform_6, window_bounds = array<i64: 1, 32>}, {pipeline_mode = #tpu.pipeline_mode<synchronous>, transform_indices = @transform_7, window_bounds = array<i64: 32, 64>}, {pipeline_mode = #tpu.pipeline_mode<synchronous>, transform_indices = @transform_8, window_bounds = array<i64: 1, 64>}, {pipeline_mode = #tpu.pipeline_mode<synchronous>, transform_indices = @transform_9, window_bounds = array<i64: 32, 32>}, {pipeline_mode = #tpu.pipeline_mode<synchronous>, transform_indices = @transform_10, window_bounds = array<i64: 1, 32>}, {transform_indices = @transform_11, window_bounds = array<i64: 1, 4, 32>}]} {
    %c0 = arith.constant 0 : index
    %c0_0 = arith.constant 0 : index
    %c0_1 = arith.constant 0 : index
    %0 = vector.load %arg1[%c0, %c0_0, %c0_1] : memref<1x4x32xf32, #tpu.memory_space<vmem>>, vector<1x4x32xf32>
    %1 = vector.shape_cast %0 : vector<1x4x32xf32> to vector<4x32xf32>
    %c0_2 = arith.constant 0 : index
    %c0_3 = arith.constant 0 : index
    %2 = vector.load %arg4[%c0_2, %c0_3] : memref<1x32xf32, #tpu.memory_space<vmem>>, vector<1x32xf32>
    %c0_4 = arith.constant 0 : index
    %c0_5 = arith.constant 0 : index
    %3 = vector.load %arg5[%c0_4, %c0_5] : memref<1x32xf32, #tpu.memory_space<vmem>>, vector<1x32xf32>
    %cst = arith.constant dense<0.000000e+00> : vector<4xf32>
    %4 = vector.multi_reduction <add>, %1, %cst [1] : vector<4x32xf32> to vector<4xf32>
    %5 = vector.shape_cast %4 : vector<4xf32> to vector<4x1xf32>
    %cst_6 = arith.constant 3.200000e+01 : f32
    %6 = vector.broadcast %cst_6 : f32 to vector<4x1xf32>
    %7 = arith.divf %5, %6 : vector<4x1xf32>
    %8 = vector.broadcast %7 : vector<4x1xf32> to vector<4x32xf32>
    %9 = arith.subf %1, %8 : vector<4x32xf32>
    %10 = arith.mulf %9, %9 : vector<4x32xf32>
    %cst_7 = arith.constant dense<0.000000e+00> : vector<4xf32>
    %11 = vector.multi_reduction <add>, %10, %cst_7 [1] : vector<4x32xf32> to vector<4xf32>
    %12 = vector.shape_cast %11 : vector<4xf32> to vector<4x1xf32>
    %cst_8 = arith.constant 3.100000e+01 : f32
    %13 = vector.broadcast %cst_8 : f32 to vector<4x1xf32>
    %14 = arith.divf %12, %13 : vector<4x1xf32>
    %15 = vector.broadcast %2 : vector<1x32xf32> to vector<4x32xf32>
    %16 = arith.mulf %15, %9 : vector<4x32xf32>
    %17 = math.sqrt %14 : vector<4x1xf32>
    %cst_9 = arith.constant 9.99999997E-7 : f32
    %18 = vector.broadcast %cst_9 : f32 to vector<4x1xf32>
    %19 = arith.addf %17, %18 : vector<4x1xf32>
    %20 = vector.broadcast %19 : vector<4x1xf32> to vector<4x32xf32>
    %21 = arith.divf %16, %20 : vector<4x32xf32>
    %22 = vector.broadcast %3 : vector<1x32xf32> to vector<4x32xf32>
    %23 = arith.addf %21, %22 : vector<4x32xf32>
    %c0_10 = arith.constant 0 : index
    %c0_11 = arith.constant 0 : index
    %c0_12 = arith.constant 0 : index
    %24 = vector.load %arg2[%c0_10, %c0_11, %c0_12] : memref<1x4x32xf32, #tpu.memory_space<vmem>>, vector<1x4x32xf32>
    %25 = vector.shape_cast %24 : vector<1x4x32xf32> to vector<4x32xf32>
    %26 = arith.truncf %23 : vector<4x32xf32> to vector<4x32xbf16>
    %c0_13 = arith.constant 0 : index
    %c0_14 = arith.constant 0 : index
    %27 = vector.load %arg6[%c0_13, %c0_14] : memref<32x32xbf16, #tpu.memory_space<vmem>>, vector<32x32xbf16>
    %cst_15 = arith.constant dense<0.000000e+00> : vector<4x32xf32>
    %28 = tpu.matmul %26, %27, %cst_15 {dimension_numbers = #tpu.dot_dimension_numbers<[1], [0], [0], [1], [0, 0, 1, 1], [], []>} : vector<4x32xbf16>, vector<32x32xbf16>, vector<4x32xf32> -> vector<4x32xf32>
    %c0_16 = arith.constant 0 : index
    %c0_17 = arith.constant 0 : index
    %29 = vector.load %arg7[%c0_16, %c0_17] : memref<1x32xf32, #tpu.memory_space<vmem>>, vector<1x32xf32>
    %30 = vector.broadcast %29 : vector<1x32xf32> to vector<4x32xf32>
    %31 = arith.addf %28, %30 : vector<4x32xf32>
    %32 = arith.truncf %25 : vector<4x32xf32> to vector<4x32xbf16>
    %c0_18 = arith.constant 0 : index
    %c0_19 = arith.constant 0 : index
    %33 = vector.load %arg8[%c0_18, %c0_19] : memref<32x64xbf16, #tpu.memory_space<vmem>>, vector<32x64xbf16>
    %cst_20 = arith.constant dense<0.000000e+00> : vector<4x64xf32>
    %34 = tpu.matmul %32, %33, %cst_20 {dimension_numbers = #tpu.dot_dimension_numbers<[1], [0], [0], [1], [0, 0, 1, 1], [], []>} : vector<4x32xbf16>, vector<32x64xbf16>, vector<4x64xf32> -> vector<4x64xf32>
    %c0_21 = arith.constant 0 : index
    %c0_22 = arith.constant 0 : index
    %35 = vector.load %arg9[%c0_21, %c0_22] : memref<1x64xf32, #tpu.memory_space<vmem>>, vector<1x64xf32>
    %36 = vector.broadcast %35 : vector<1x64xf32> to vector<4x64xf32>
    %37 = arith.addf %34, %36 : vector<4x64xf32>
    %38 = vector.extract_strided_slice %37 {offsets = [0, 0], sizes = [4, 32], strides = [1, 1]} : vector<4x64xf32> to vector<4x32xf32>
    %39 = vector.extract_strided_slice %37 {offsets = [0, 32], sizes = [4, 32], strides = [1, 1]} : vector<4x64xf32> to vector<4x32xf32>
    %c0_23 = arith.constant 0 : index
    %c0_24 = arith.constant 0 : index
    %c0_25 = arith.constant 0 : index
    %40 = vector.load %arg3[%c0_23, %c0_24, %c0_25] : memref<1x4x4xf32, #tpu.memory_space<vmem>>, vector<1x4x4xf32>
    %41 = vector.shape_cast %40 : vector<1x4x4xf32> to vector<4x4xf32>
    %42 = vector.extract_strided_slice %31 {offsets = [0, 0], sizes = [4, 8], strides = [1, 1]} : vector<4x32xf32> to vector<4x8xf32>
    %43 = arith.truncf %42 : vector<4x8xf32> to vector<4x8xbf16>
    %44 = vector.extract_strided_slice %38 {offsets = [0, 0], sizes = [4, 8], strides = [1, 1]} : vector<4x32xf32> to vector<4x8xf32>
    %45 = arith.truncf %44 : vector<4x8xf32> to vector<4x8xbf16>
    %46 = vector.extract_strided_slice %39 {offsets = [0, 0], sizes = [4, 8], strides = [1, 1]} : vector<4x32xf32> to vector<4x8xf32>
    %47 = arith.truncf %46 : vector<4x8xf32> to vector<4x8xbf16>
    %cst_26 = arith.constant dense<0.000000e+00> : vector<4x4xf32>
    %48 = tpu.matmul %43, %45, %cst_26 {dimension_numbers = #tpu.dot_dimension_numbers<[1], [1], [0], [0], [0, 0, 1, 0], [], []>} : vector<4x8xbf16>, vector<4x8xbf16>, vector<4x4xf32> -> vector<4x4xf32>
    %cst_27 = arith.constant 0.353553385 : f32
    %49 = vector.broadcast %cst_27 : f32 to vector<4x4xf32>
    %50 = arith.mulf %48, %49 : vector<4x4xf32>
    %cst_28 = arith.constant 0.000000e+00 : f32
    %51 = vector.broadcast %cst_28 : f32 to vector<4x4xf32>
    %52 = arith.cmpf oeq, %41, %51 : vector<4x4xf32>
    %cst_29 = arith.constant -1.000000e+09 : f32
    %53 = vector.broadcast %cst_29 : f32 to vector<4x4xf32>
    %54 = arith.select %52, %53, %50 : vector<4x4xi1>, vector<4x4xf32>
    %cst_30 = arith.constant dense<0xFF800000> : vector<4xf32>
    %55 = vector.multi_reduction <maximumf>, %54, %cst_30 [1] : vector<4x4xf32> to vector<4xf32>
    %56 = vector.shape_cast %55 : vector<4xf32> to vector<4x1xf32>
    %57 = vector.broadcast %56 : vector<4x1xf32> to vector<4x4xf32>
    %58 = arith.subf %54, %57 : vector<4x4xf32>
    %59 = math.exp %58 : vector<4x4xf32>
    %cst_31 = arith.constant dense<0.000000e+00> : vector<4xf32>
    %60 = vector.multi_reduction <add>, %59, %cst_31 [1] : vector<4x4xf32> to vector<4xf32>
    %61 = vector.shape_cast %60 : vector<4xf32> to vector<4x1xf32>
    %62 = tpu.reciprocal %61 {approx = true} : vector<4x1xf32> -> vector<4x1xf32>
    %63 = vector.broadcast %62 : vector<4x1xf32> to vector<4x4xf32>
    %64 = arith.mulf %59, %63 : vector<4x4xf32>
    %65 = arith.truncf %64 : vector<4x4xf32> to vector<4x4xbf16>
    %cst_32 = arith.constant dense<0.000000e+00> : vector<4x8xf32>
    %66 = tpu.matmul %65, %47, %cst_32 {dimension_numbers = #tpu.dot_dimension_numbers<[1], [0], [0], [1], [0, 0, 1, 1], [], []>} : vector<4x4xbf16>, vector<4x8xbf16>, vector<4x8xf32> -> vector<4x8xf32>
    %67 = vector.extract_strided_slice %31 {offsets = [0, 8], sizes = [4, 8], strides = [1, 1]} : vector<4x32xf32> to vector<4x8xf32>
    %68 = arith.truncf %67 : vector<4x8xf32> to vector<4x8xbf16>
    %69 = vector.extract_strided_slice %38 {offsets = [0, 8], sizes = [4, 8], strides = [1, 1]} : vector<4x32xf32> to vector<4x8xf32>
    %70 = arith.truncf %69 : vector<4x8xf32> to vector<4x8xbf16>
    %71 = vector.extract_strided_slice %39 {offsets = [0, 8], sizes = [4, 8], strides = [1, 1]} : vector<4x32xf32> to vector<4x8xf32>
    %72 = arith.truncf %71 : vector<4x8xf32> to vector<4x8xbf16>
    %cst_33 = arith.constant dense<0.000000e+00> : vector<4x4xf32>
    %73 = tpu.matmul %68, %70, %cst_33 {dimension_numbers = #tpu.dot_dimension_numbers<[1], [1], [0], [0], [0, 0, 1, 0], [], []>} : vector<4x8xbf16>, vector<4x8xbf16>, vector<4x4xf32> -> vector<4x4xf32>
    %cst_34 = arith.constant 0.353553385 : f32
    %74 = vector.broadcast %cst_34 : f32 to vector<4x4xf32>
    %75 = arith.mulf %73, %74 : vector<4x4xf32>
    %cst_35 = arith.constant 0.000000e+00 : f32
    %76 = vector.broadcast %cst_35 : f32 to vector<4x4xf32>
    %77 = arith.cmpf oeq, %41, %76 : vector<4x4xf32>
    %cst_36 = arith.constant -1.000000e+09 : f32
    %78 = vector.broadcast %cst_36 : f32 to vector<4x4xf32>
    %79 = arith.select %77, %78, %75 : vector<4x4xi1>, vector<4x4xf32>
    %cst_37 = arith.constant dense<0xFF800000> : vector<4xf32>
    %80 = vector.multi_reduction <maximumf>, %79, %cst_37 [1] : vector<4x4xf32> to vector<4xf32>
    %81 = vector.shape_cast %80 : vector<4xf32> to vector<4x1xf32>
    %82 = vector.broadcast %81 : vector<4x1xf32> to vector<4x4xf32>
    %83 = arith.subf %79, %82 : vector<4x4xf32>
    %84 = math.exp %83 : vector<4x4xf32>
    %cst_38 = arith.constant dense<0.000000e+00> : vector<4xf32>
    %85 = vector.multi_reduction <add>, %84, %cst_38 [1] : vector<4x4xf32> to vector<4xf32>
    %86 = vector.shape_cast %85 : vector<4xf32> to vector<4x1xf32>
    %87 = tpu.reciprocal %86 {approx = true} : vector<4x1xf32> -> vector<4x1xf32>
    %88 = vector.broadcast %87 : vector<4x1xf32> to vector<4x4xf32>
    %89 = arith.mulf %84, %88 : vector<4x4xf32>
    %90 = arith.truncf %89 : vector<4x4xf32> to vector<4x4xbf16>
    %cst_39 = arith.constant dense<0.000000e+00> : vector<4x8xf32>
    %91 = tpu.matmul %90, %72, %cst_39 {dimension_numbers = #tpu.dot_dimension_numbers<[1], [0], [0], [1], [0, 0, 1, 1], [], []>} : vector<4x4xbf16>, vector<4x8xbf16>, vector<4x8xf32> -> vector<4x8xf32>
    %92 = vector.extract_strided_slice %31 {offsets = [0, 16], sizes = [4, 8], strides = [1, 1]} : vector<4x32xf32> to vector<4x8xf32>
    %93 = arith.truncf %92 : vector<4x8xf32> to vector<4x8xbf16>
    %94 = vector.extract_strided_slice %38 {offsets = [0, 16], sizes = [4, 8], strides = [1, 1]} : vector<4x32xf32> to vector<4x8xf32>
    %95 = arith.truncf %94 : vector<4x8xf32> to vector<4x8xbf16>
    %96 = vector.extract_strided_slice %39 {offsets = [0, 16], sizes = [4, 8], strides = [1, 1]} : vector<4x32xf32> to vector<4x8xf32>
    %97 = arith.truncf %96 : vector<4x8xf32> to vector<4x8xbf16>
    %cst_40 = arith.constant dense<0.000000e+00> : vector<4x4xf32>
    %98 = tpu.matmul %93, %95, %cst_40 {dimension_numbers = #tpu.dot_dimension_numbers<[1], [1], [0], [0], [0, 0, 1, 0], [], []>} : vector<4x8xbf16>, vector<4x8xbf16>, vector<4x4xf32> -> vector<4x4xf32>
    %cst_41 = arith.constant 0.353553385 : f32
    %99 = vector.broadcast %cst_41 : f32 to vector<4x4xf32>
    %100 = arith.mulf %98, %99 : vector<4x4xf32>
    %cst_42 = arith.constant 0.000000e+00 : f32
    %101 = vector.broadcast %cst_42 : f32 to vector<4x4xf32>
    %102 = arith.cmpf oeq, %41, %101 : vector<4x4xf32>
    %cst_43 = arith.constant -1.000000e+09 : f32
    %103 = vector.broadcast %cst_43 : f32 to vector<4x4xf32>
    %104 = arith.select %102, %103, %100 : vector<4x4xi1>, vector<4x4xf32>
    %cst_44 = arith.constant dense<0xFF800000> : vector<4xf32>
    %105 = vector.multi_reduction <maximumf>, %104, %cst_44 [1] : vector<4x4xf32> to vector<4xf32>
    %106 = vector.shape_cast %105 : vector<4xf32> to vector<4x1xf32>
    %107 = vector.broadcast %106 : vector<4x1xf32> to vector<4x4xf32>
    %108 = arith.subf %104, %107 : vector<4x4xf32>
    %109 = math.exp %108 : vector<4x4xf32>
    %cst_45 = arith.constant dense<0.000000e+00> : vector<4xf32>
    %110 = vector.multi_reduction <add>, %109, %cst_45 [1] : vector<4x4xf32> to vector<4xf32>
    %111 = vector.shape_cast %110 : vector<4xf32> to vector<4x1xf32>
    %112 = tpu.reciprocal %111 {approx = true} : vector<4x1xf32> -> vector<4x1xf32>
    %113 = vector.broadcast %112 : vector<4x1xf32> to vector<4x4xf32>
    %114 = arith.mulf %109, %113 : vector<4x4xf32>
    %115 = arith.truncf %114 : vector<4x4xf32> to vector<4x4xbf16>
    %cst_46 = arith.constant dense<0.000000e+00> : vector<4x8xf32>
    %116 = tpu.matmul %115, %97, %cst_46 {dimension_numbers = #tpu.dot_dimension_numbers<[1], [0], [0], [1], [0, 0, 1, 1], [], []>} : vector<4x4xbf16>, vector<4x8xbf16>, vector<4x8xf32> -> vector<4x8xf32>
    %117 = vector.extract_strided_slice %31 {offsets = [0, 24], sizes = [4, 8], strides = [1, 1]} : vector<4x32xf32> to vector<4x8xf32>
    %118 = arith.truncf %117 : vector<4x8xf32> to vector<4x8xbf16>
    %119 = vector.extract_strided_slice %38 {offsets = [0, 24], sizes = [4, 8], strides = [1, 1]} : vector<4x32xf32> to vector<4x8xf32>
    %120 = arith.truncf %119 : vector<4x8xf32> to vector<4x8xbf16>
    %121 = vector.extract_strided_slice %39 {offsets = [0, 24], sizes = [4, 8], strides = [1, 1]} : vector<4x32xf32> to vector<4x8xf32>
    %122 = arith.truncf %121 : vector<4x8xf32> to vector<4x8xbf16>
    %cst_47 = arith.constant dense<0.000000e+00> : vector<4x4xf32>
    %123 = tpu.matmul %118, %120, %cst_47 {dimension_numbers = #tpu.dot_dimension_numbers<[1], [1], [0], [0], [0, 0, 1, 0], [], []>} : vector<4x8xbf16>, vector<4x8xbf16>, vector<4x4xf32> -> vector<4x4xf32>
    %cst_48 = arith.constant 0.353553385 : f32
    %124 = vector.broadcast %cst_48 : f32 to vector<4x4xf32>
    %125 = arith.mulf %123, %124 : vector<4x4xf32>
    %cst_49 = arith.constant 0.000000e+00 : f32
    %126 = vector.broadcast %cst_49 : f32 to vector<4x4xf32>
    %127 = arith.cmpf oeq, %41, %126 : vector<4x4xf32>
    %cst_50 = arith.constant -1.000000e+09 : f32
    %128 = vector.broadcast %cst_50 : f32 to vector<4x4xf32>
    %129 = arith.select %127, %128, %125 : vector<4x4xi1>, vector<4x4xf32>
    %cst_51 = arith.constant dense<0xFF800000> : vector<4xf32>
    %130 = vector.multi_reduction <maximumf>, %129, %cst_51 [1] : vector<4x4xf32> to vector<4xf32>
    %131 = vector.shape_cast %130 : vector<4xf32> to vector<4x1xf32>
    %132 = vector.broadcast %131 : vector<4x1xf32> to vector<4x4xf32>
    %133 = arith.subf %129, %132 : vector<4x4xf32>
    %134 = math.exp %133 : vector<4x4xf32>
    %cst_52 = arith.constant dense<0.000000e+00> : vector<4xf32>
    %135 = vector.multi_reduction <add>, %134, %cst_52 [1] : vector<4x4xf32> to vector<4xf32>
    %136 = vector.shape_cast %135 : vector<4xf32> to vector<4x1xf32>
    %137 = tpu.reciprocal %136 {approx = true} : vector<4x1xf32> -> vector<4x1xf32>
    %138 = vector.broadcast %137 : vector<4x1xf32> to vector<4x4xf32>
    %139 = arith.mulf %134, %138 : vector<4x4xf32>
    %140 = arith.truncf %139 : vector<4x4xf32> to vector<4x4xbf16>
    %cst_53 = arith.constant dense<0.000000e+00> : vector<4x8xf32>
    %141 = tpu.matmul %140, %122, %cst_53 {dimension_numbers = #tpu.dot_dimension_numbers<[1], [0], [0], [1], [0, 0, 1, 1], [], []>} : vector<4x4xbf16>, vector<4x8xbf16>, vector<4x8xf32> -> vector<4x8xf32>
    %142 = tpu.concatenate %66, %91, %116, %141 in 1 : vector<4x8xf32>, vector<4x8xf32>, vector<4x8xf32>, vector<4x8xf32> -> vector<4x32xf32>
    %143 = arith.truncf %142 : vector<4x32xf32> to vector<4x32xbf16>
    %c0_54 = arith.constant 0 : index
    %c0_55 = arith.constant 0 : index
    %144 = vector.load %arg10[%c0_54, %c0_55] : memref<32x32xbf16, #tpu.memory_space<vmem>>, vector<32x32xbf16>
    %cst_56 = arith.constant dense<0.000000e+00> : vector<4x32xf32>
    %145 = tpu.matmul %143, %144, %cst_56 {dimension_numbers = #tpu.dot_dimension_numbers<[1], [0], [0], [1], [0, 0, 1, 1], [], []>} : vector<4x32xbf16>, vector<32x32xbf16>, vector<4x32xf32> -> vector<4x32xf32>
    %c0_57 = arith.constant 0 : index
    %c0_58 = arith.constant 0 : index
    %146 = vector.load %arg11[%c0_57, %c0_58] : memref<1x32xf32, #tpu.memory_space<vmem>>, vector<1x32xf32>
    %147 = vector.broadcast %146 : vector<1x32xf32> to vector<4x32xf32>
    %148 = arith.addf %145, %147 : vector<4x32xf32>
    %149 = arith.addf %1, %148 : vector<4x32xf32>
    %c0_59 = arith.constant 0 : index
    %c0_60 = arith.constant 0 : index
    %c0_61 = arith.constant 0 : index
    %150 = vector.load %arg12[%c0_59, %c0_60, %c0_61] : memref<1x4x32xf32, #tpu.memory_space<vmem>>, vector<1x4x32xf32>
    %151 = vector.shape_cast %150 : vector<1x4x32xf32> to vector<4x32xf32>
    %152 = vector.shape_cast %149 : vector<4x32xf32> to vector<1x4x32xf32>
    tpu.vector_store %arg12[%c0_59, %c0_60, %c0_61], %152 {strides = array<i32>} : memref<1x4x32xf32, #tpu.memory_space<vmem>>, vector<1x4x32xf32>,
    return
  }
  func.func @transform_0(%arg0: i32) -> (i32, i32, i32) {
    %c0_i32 = arith.constant 0 : i32
    %c0_i32_0 = arith.constant 0 : i32
    %c0_i32_1 = arith.constant 0 : i32
    return %arg0, %c0_i32, %c0_i32_0 : i32, i32, i32
  }
  func.func @transform_1(%arg0: i32) -> (i32, i32, i32) {
    %c0_i32 = arith.constant 0 : i32
    %c0_i32_0 = arith.constant 0 : i32
    %c0_i32_1 = arith.constant 0 : i32
    return %arg0, %c0_i32, %c0_i32_0 : i32, i32, i32
  }
  func.func @transform_2(%arg0: i32) -> (i32, i32, i32) {
    %c0_i32 = arith.constant 0 : i32
    %c0_i32_0 = arith.constant 0 : i32
    %c0_i32_1 = arith.constant 0 : i32
    return %arg0, %c0_i32, %c0_i32_0 : i32, i32, i32
  }
  func.func @transform_3(%arg0: i32) -> (i32, i32) {
    %c0_i32 = arith.constant 0 : i32
    %c0_i32_0 = arith.constant 0 : i32
    %c0_i32_1 = arith.constant 0 : i32
    return %c0_i32, %c0_i32_0 : i32, i32
  }
  func.func @transform_4(%arg0: i32) -> (i32, i32) {
    %c0_i32 = arith.constant 0 : i32
    %c0_i32_0 = arith.constant 0 : i32
    %c0_i32_1 = arith.constant 0 : i32
    return %c0_i32, %c0_i32_0 : i32, i32
  }
  func.func @transform_5(%arg0: i32) -> (i32, i32) {
    %c0_i32 = arith.constant 0 : i32
    %c0_i32_0 = arith.constant 0 : i32
    %c0_i32_1 = arith.constant 0 : i32
    return %c0_i32, %c0_i32_0 : i32, i32
  }
  func.func @transform_6(%arg0: i32) -> (i32, i32) {
    %c0_i32 = arith.constant 0 : i32
    %c0_i32_0 = arith.constant 0 : i32
    %c0_i32_1 = arith.constant 0 : i32
    return %c0_i32, %c0_i32_0 : i32, i32
  }
  func.func @transform_7(%arg0: i32) -> (i32, i32) {
    %c0_i32 = arith.constant 0 : i32
    %c0_i32_0 = arith.constant 0 : i32
    %c0_i32_1 = arith.constant 0 : i32
    return %c0_i32, %c0_i32_0 : i32, i32
  }
  func.func @transform_8(%arg0: i32) -> (i32, i32) {
    %c0_i32 = arith.constant 0 : i32
    %c0_i32_0 = arith.constant 0 : i32
    %c0_i32_1 = arith.constant 0 : i32
    return %c0_i32, %c0_i32_0 : i32, i32
  }
  func.func @transform_9(%arg0: i32) -> (i32, i32) {
    %c0_i32 = arith.constant 0 : i32
    %c0_i32_0 = arith.constant 0 : i32
    %c0_i32_1 = arith.constant 0 : i32
    return %c0_i32, %c0_i32_0 : i32, i32
  }
  func.func @transform_10(%arg0: i32) -> (i32, i32) {
    %c0_i32 = arith.constant 0 : i32
    %c0_i32_0 = arith.constant 0 : i32
    %c0_i32_1 = arith.constant 0 : i32
    return %c0_i32, %c0_i32_0 : i32, i32
  }
  func.func @transform_11(%arg0: i32) -> (i32, i32, i32) {
    %c0_i32 = arith.constant 0 : i32
    %c0_i32_0 = arith.constant 0 : i32
    %c0_i32_1 = arith.constant 0 : i32
    return %arg0, %c0_i32, %c0_i32_0 : i32, i32, i32
  }
}

module attributes {stable_mosaic.version = 11 : i64} {
  func.func @layernorm_kernel(%arg0: i32, %arg1: memref<8x32xf32, #tpu.memory_space<vmem>>, %arg2: memref<1x32xf32, #tpu.memory_space<vmem>>, %arg3: memref<1x32xf32, #tpu.memory_space<vmem>>, %arg4: memref<8x32xf32, #tpu.memory_space<vmem>>) attributes {dimension_semantics = [#tpu.dimension_semantics<parallel>], iteration_bounds = array<i64: 1>, scalar_prefetch = 0 : i64, scratch_operands = 0 : i64, tpu.core_type = #tpu.core_type<tc>, window_params = [{transform_indices = @transform_0, window_bounds = array<i64: 8, 32>}, {pipeline_mode = #tpu.pipeline_mode<synchronous>, transform_indices = @transform_1, window_bounds = array<i64: 1, 32>}, {pipeline_mode = #tpu.pipeline_mode<synchronous>, transform_indices = @transform_2, window_bounds = array<i64: 1, 32>}, {transform_indices = @transform_3, window_bounds = array<i64: 8, 32>}]} {
    %c0 = arith.constant 0 : index
    %c0_0 = arith.constant 0 : index
    %0 = vector.load %arg1[%c0, %c0_0] : memref<8x32xf32, #tpu.memory_space<vmem>>, vector<8x32xf32>
    %c0_1 = arith.constant 0 : index
    %c0_2 = arith.constant 0 : index
    %1 = vector.load %arg2[%c0_1, %c0_2] : memref<1x32xf32, #tpu.memory_space<vmem>>, vector<1x32xf32>
    %c0_3 = arith.constant 0 : index
    %c0_4 = arith.constant 0 : index
    %2 = vector.load %arg3[%c0_3, %c0_4] : memref<1x32xf32, #tpu.memory_space<vmem>>, vector<1x32xf32>
    %cst = arith.constant dense<0.000000e+00> : vector<8xf32>
    %3 = vector.multi_reduction <add>, %0, %cst [1] : vector<8x32xf32> to vector<8xf32>
    %4 = vector.shape_cast %3 : vector<8xf32> to vector<8x1xf32>
    %cst_5 = arith.constant 3.200000e+01 : f32
    %5 = vector.broadcast %cst_5 : f32 to vector<8x1xf32>
    %6 = arith.divf %4, %5 : vector<8x1xf32>
    %7 = vector.broadcast %6 : vector<8x1xf32> to vector<8x32xf32>
    %8 = arith.subf %0, %7 : vector<8x32xf32>
    %9 = arith.mulf %8, %8 : vector<8x32xf32>
    %cst_6 = arith.constant dense<0.000000e+00> : vector<8xf32>
    %10 = vector.multi_reduction <add>, %9, %cst_6 [1] : vector<8x32xf32> to vector<8xf32>
    %11 = vector.shape_cast %10 : vector<8xf32> to vector<8x1xf32>
    %cst_7 = arith.constant 3.100000e+01 : f32
    %12 = vector.broadcast %cst_7 : f32 to vector<8x1xf32>
    %13 = arith.divf %11, %12 : vector<8x1xf32>
    %14 = vector.broadcast %1 : vector<1x32xf32> to vector<8x32xf32>
    %15 = arith.mulf %14, %8 : vector<8x32xf32>
    %16 = math.sqrt %13 : vector<8x1xf32>
    %cst_8 = arith.constant 9.99999997E-7 : f32
    %17 = vector.broadcast %cst_8 : f32 to vector<8x1xf32>
    %18 = arith.addf %16, %17 : vector<8x1xf32>
    %19 = vector.broadcast %18 : vector<8x1xf32> to vector<8x32xf32>
    %20 = arith.divf %15, %19 : vector<8x32xf32>
    %21 = vector.broadcast %2 : vector<1x32xf32> to vector<8x32xf32>
    %22 = arith.addf %20, %21 : vector<8x32xf32>
    %c0_9 = arith.constant 0 : index
    %c0_10 = arith.constant 0 : index
    %23 = vector.load %arg4[%c0_9, %c0_10] : memref<8x32xf32, #tpu.memory_space<vmem>>, vector<8x32xf32>
    tpu.vector_store %arg4[%c0_9, %c0_10], %22 {strides = array<i32>} : memref<8x32xf32, #tpu.memory_space<vmem>>, vector<8x32xf32>,
    return
  }
  func.func @transform_0(%arg0: i32) -> (i32, i32) {
    %c0_i32 = arith.constant 0 : i32
    %c0_i32_0 = arith.constant 0 : i32
    return %arg0, %c0_i32 : i32, i32
  }
  func.func @transform_1(%arg0: i32) -> (i32, i32) {
    %c0_i32 = arith.constant 0 : i32
    %c0_i32_0 = arith.constant 0 : i32
    %c0_i32_1 = arith.constant 0 : i32
    return %c0_i32, %c0_i32_0 : i32, i32
  }
  func.func @transform_2(%arg0: i32) -> (i32, i32) {
    %c0_i32 = arith.constant 0 : i32
    %c0_i32_0 = arith.constant 0 : i32
    %c0_i32_1 = arith.constant 0 : i32
    return %c0_i32, %c0_i32_0 : i32, i32
  }
  func.func @transform_3(%arg0: i32) -> (i32, i32) {
    %c0_i32 = arith.constant 0 : i32
    %c0_i32_0 = arith.constant 0 : i32
    return %arg0, %c0_i32 : i32, i32
  }
}

</mosaic_0001>

<bundles_post_ra>
// kernel: encoder_decoder_forward.16
= control target key start
LH: loop header
LB: loop body
LE: loop exit
PB: predicated region body
PF: predicated region fallthrough
CT: control target
= control target key end

     0   :  { %vm17_vm0 = vcmask 261120   ;;  %s100_s0 = inlined_call_operand.vmem [shape: f32[8,32], index: 0, kind: input, shape index: {}]   ;;  %s101_s1 = inlined_call_operand.vmem [shape: f32[1,32], index: 1, kind: input, shape index: {}]   ;;  %s102_s2 = inlined_call_operand.vmem [shape: f32[1,32], index: 2, kind: input, shape index: {}]   ;;  %s103_s3 = inlined_call_operand.vmem [shape: f32[8,32], index: 3, kind: output, shape index: {}]  }
   0x1   :  { %v14_v0 = vld [vmem:[%s100_s0] sm:$0xff] }
   0x2   :  { %v18_v1 = vsel %vm17_vm0, %v14_v0, 0.0  ;;  %v59_v15 = vld [vmem:[%s101_s1] ss:$0 sm:$0xff] }
   0x3   :  { %19 = vadd.xlane.f32.xlu0 %v18_v1  ;;  %v60_v18 = vld [vmem:[%s102_s2] ss:$0 sm:$0xff] }
  0x90   :  { %v20_v2 = vpop.xlane.xlu0 %19 }
  0x91   :  { %v22_v3 = vmul.f32 0.03125, %v20_v2 }
  0x93   :  { %v23_v4 = vsub.f32 %v14_v0, %v22_v3 }
  0x95   :  { %v24_v5 = vmul.f32 %v23_v4, %v23_v4  ;;  %v36_v16 = vmul.f32 %v59_v15, %v23_v4 }
  0x97   :  { %v25_v6 = vsel %vm17_vm0, %v24_v5, 0.0 }
  0x98   :  { %26 = vadd.xlane.f32.xlu0 %v25_v6 }
 0x125   :  { %v27_v7 = vpop.xlane.xlu0 %26 }
 0x126   :  { %v29_v8 = vmul.f32 0.032258064, %v27_v7 }
 0x128   :  { %61 = vrsqrt.f32 %v29_v8  ;;  %vm39_vm1 = vcmp.eq.f32.partialorder %v29_v8, inf  ;;  %v42_v11 = vand.u32 2147483648, %v29_v8  ;;  %vm41_vm2 = vcmp.eq.f32.partialorder %v29_v8, 0.0 }
 0x132   :  { %v62_v9 = vpop.eup %61 }
 0x133   :  { %v38_v10 = vmul.f32 %v62_v9, %v29_v8 }
 0x135   :  { %v40_v12 = vsel %vm39_vm1, %v29_v8, %v38_v10 }
 0x136   :  { %v43_v13 = vsel %vm41_vm2, %v42_v11, %v40_v12 }
 0x137   :  { %v44_v14 = vadd.f32 1e-06, %v43_v13 }
 0x139   :  { %63 = vrcp.f32 %v44_v14 }
 0x143   :  { %v64_v17 = vpop.eup %63 }
 0x144   :  { %v46_v19 = vmul.f32 %v64_v17, %v36_v16 }
 0x146   :  { %v53_v20 = vadd.f32 %v60_v18, %v46_v19 }
 0x148   :  { %54 = vst.msk [vmem:[%s103_s3] sm:$0xff] %vm17_vm0, %v53_v20 }

// kernel: encoder_decoder_forward.13
= control target key start
LH: loop header
LB: loop body
LE: loop exit
PB: predicated region body
PF: predicated region fallthrough
CT: control target
= control target key end

     0   :  { %vm30_vm0 = vcmask 261120   ;;  %v277_v7 = vmov 0.0   ;;  %vm278_vm1 = vmmov 0   ;;  %vm175_vm4 = vcmask 523264   ;;  %s364_s0 = inlined_call_operand.vmem [shape: f32[8,32], index: 0, kind: input, shape index: {}]   ;;  %s365_s3 = inlined_call_operand.vmem [shape: bf16[32,64], index: 3, kind: input, shape index: {}]   ;;  %s366_s5 = inlined_call_operand.vmem [shape: bf16[64,32], index: 5, kind: input, shape index: {}]   ;;  %s367_s1 = inlined_call_operand.vmem [shape: f32[1,32], index: 1, kind: input, shape index: {}]   ;;  %s368_s2 = inlined_call_operand.vmem [shape: f32[1,32], index: 2, kind: input, shape index: {}]   ;;  %s369_s4 = inlined_call_operand.vmem [shape: f32[1,64], index: 4, kind: input, shape index: {}]   ;;  %s370_s6 = inlined_call_operand.vmem [shape: f32[1,32], index: 6, kind: input, shape index: {}]   ;;  %s371_s7 = inlined_call_operand.vmem [shape: f32[8,32], index: 7, kind: output, shape index: {}]  }
   0x1   :  { %v322_v0 = vld [vmem:[%s364_s0] sm:$0xff]  ;;  %245 = vmatprep.subr.bf16.mxu0 %v277_v7  ;;  %249 = vmatprep.mubr.msk.bf16.mxu0 %vm278_vm1, %v277_v7  ;;  %v268_v9 = vld [vmem:[%s365_s3 + $0x8] sm:$0xff]   ;;  %v271_v27 = vld [vmem:[%s366_s5 + $0x10] sm:$0xff]  }
   0x2   :  { %v31_v1 = vsel %vm30_vm0, %v322_v0, 0.0  ;;  %v267_v8 = vld [vmem:[%s365_s3] sm:$0xff]   ;;  %253 = vmatprep.subr.bf16.mxu1 %v277_v7  ;;  %261 = vmatprep.mubr.msk.bf16.mxu1 %vm278_vm1, %v277_v7  ;;  %v270_v11 = vld [vmem:[%s366_s5 + $0x8] sm:$0xff]   ;;  %v272_v28 = vld [vmem:[%s366_s5 + $0x18] sm:$0xff]  }
   0x3   :  { %32 = vadd.xlane.f32.xlu0 %v31_v1  ;;  %246 = vmatpush3.bf16.msra.mxu0 %v267_v8  ;;  %v269_v10 = vld [vmem:[%s366_s5] sm:$0xff]  }
   0x4   :  { %247 = vmatprep.subr.bf16.mxu0 %v277_v7  ;;  %254 = vmatpush3.bf16.msra.mxu1 %v269_v10  ;;  %v225_v20 = vld [vmem:[%s367_s1] ss:$0 sm:$0xff] }
   0x5   :  { %255 = vmatprep.subr.bf16.mxu1 %v277_v7  ;;  %v226_v23 = vld [vmem:[%s368_s2] ss:$0 sm:$0xff] }
   0x6   :  { %v227_v29 = vld [vmem:[%s369_s4] ss:$0 sm:$0xff] }
   0x7   :  { %248 = vmatpush3.bf16.msra.mxu0 %v268_v9  ;;  %v231_v37 = vld [vmem:[%s370_s6] ss:$0 sm:$0xff] }
   0x8   :  { %256 = vmatpush3.bf16.msra.mxu1 %v270_v11 }
   0x9   :  { %257 = vmatprep.subr.bf16.mxu1 %v277_v7 }
   0xc   :  { %258 = vmatpush3.bf16.msra.mxu1 %v271_v27 }
   0xd   :  { %259 = vmatprep.subr.bf16.mxu1 %v277_v7 }
  0x10   :  { %260 = vmatpush3.bf16.msra.mxu1 %v272_v28 }
  0x90   :  { %v33_v2 = vpop.xlane.xlu0 %32 }
  0x91   :  { %v35_v3 = vmul.f32 0.03125, %v33_v2 }
  0x93   :  { %v36_v4 = vsub.f32 %v322_v0, %v35_v3 }
  0x95   :  { %v37_v5 = vmul.f32 %v36_v4, %v36_v4  ;;  %v49_v21 = vmul.f32 %v225_v20, %v36_v4 }
  0x97   :  { %v38_v6 = vsel %vm30_vm0, %v37_v5, 0.0 }
  0x98   :  { %39 = vadd.xlane.f32.xlu0 %v38_v6 }
 0x125   :  { %v40_v12 = vpop.xlane.xlu0 %39 }
 0x126   :  { %v42_v13 = vmul.f32 0.032258064, %v40_v12 }
 0x128   :  { %273 = vrsqrt.f32 %v42_v13  ;;  %vm52_vm2 = vcmp.eq.f32.partialorder %v42_v13, inf  ;;  %v55_v16 = vand.u32 2147483648, %v42_v13  ;;  %vm54_vm3 = vcmp.eq.f32.partialorder %v42_v13, 0.0 }
 0x132   :  { %v274_v14 = vpop.eup %273 }
 0x133   :  { %v51_v15 = vmul.f32 %v274_v14, %v42_v13 }
 0x135   :  { %v53_v17 = vsel %vm52_vm2, %v42_v13, %v51_v15 }
 0x136   :  { %v56_v18 = vsel %vm54_vm3, %v55_v16, %v53_v17 }
 0x137   :  { %v57_v19 = vadd.f32 1e-06, %v56_v18 }
 0x139   :  { %275 = vrcp.f32 %v57_v19 }
 0x143   :  { %v276_v22 = vpop.eup %275 }
 0x144   :  { %v59_v24 = vmul.f32 %v276_v22, %v49_v21 }
 0x146   :  { %v66_v25 = vadd.f32 %v226_v23, %v59_v24 }
 0x148   :  { %v67_v26 = vpack.c.bf16 %v66_v25, %v66_v25 }
 0x14a   :  { %250 = vmatmul.mubr.msk.bf16.vlgmr.msra.gmra.mrb[0].mxu0 %vm30_vm0, %v67_v26 }
 0x21d   :  { %v128_v30 = vpop.f32.mrb[0].mxu0 }
 0x21e   :  { %v129_v31 = vadd.f32 %v227_v29, %v128_v30  ;;  %v251_v32 = vpop.f32.mrb[1].mxu0 }
 0x21f   :  { %v131_v33 = vpop.f32.mrb[2].mxu0 }
 0x220   :  { %v134_v34 = vmax.f32 %v129_v31, 0.0  ;;  %v252_v35 = vpop.f32.mrb[3].mxu0 }
 0x222   :  { %v135_v36 = vpack.c.bf16 %v134_v34, %v134_v34 }
 0x224   :  { %262 = vmatmul.mubr.msk.bf16.vlgmr.msra.gmra.mrb[0].mxu1 %vm175_vm4, %v135_v36 }
 0x2f7   :  { %v213_v38 = vpop.f32.mrb[0].mxu1 }
 0x2f8   :  { %v214_v39 = vadd.f32 %v231_v37, %v213_v38  ;;  %v263_v40 = vpop.f32.mrb[1].mxu1 }
 0x2f9   :  { %v216_v41 = vpop.f32.mrb[2].mxu1 }
 0x2fa   :  { %v219_v42 = vadd.f32 %v214_v39, %v322_v0  ;;  %v264_v43 = vpop.f32.mrb[3].mxu1 }
 0x2fc   :  { %220 = vst.msk [vmem:[%s371_s7] sm:$0xff] %vm30_vm0, %v219_v42 }

// kernel: encoder_decoder_forward.18
= control target key start
LH: loop header
LB: loop body
LE: loop exit
PB: predicated region body
PF: predicated region fallthrough
CT: control target
= control target key end

     0   :  { %s1466_s17 = smov 0   ;;  %s1614_s0 = inlined_call_operand.vmem [shape: f32[2,4,32], index: 0, kind: input, shape index: {}]   ;;  %s1615_s1 = inlined_call_operand.vmem [shape: f32[2,4,32], index: 1, kind: input, shape index: {}]   ;;  %s1616_s2 = inlined_call_operand.vmem [shape: f32[2,4,4], index: 2, kind: input, shape index: {}]   ;;  %s1617_s3 = inlined_call_operand.vmem [shape: f32[1,32], index: 3, kind: input, shape index: {}]   ;;  %s1618_s4 = inlined_call_operand.vmem [shape: f32[1,32], index: 4, kind: input, shape index: {}]   ;;  %s1619_s5 = inlined_call_operand.vmem [shape: bf16[32,32], index: 5, kind: input, shape index: {}]   ;;  %s1620_s6 = inlined_call_operand.vmem [shape: f32[1,32], index: 6, kind: input, shape index: {}]   ;;  %s1621_s7 = inlined_call_operand.vmem [shape: bf16[32,64], index: 7, kind: input, shape index: {}]   ;;  %s1622_s8 = inlined_call_operand.vmem [shape: f32[1,64], index: 8, kind: input, shape index: {}]   ;;  %s1623_s9 = inlined_call_operand.vmem [shape: bf16[32,32], index: 9, kind: input, shape index: {}]   ;;  %s1624_s10 = inlined_call_operand.vmem [shape: f32[1,32], index: 10, kind: input, shape index: {}]   ;;  %s1625_s11 = inlined_call_operand.vmem [shape: f32[2,4,32], index: 11, kind: output, shape index: {}]  }
   0x1 LB: > { %s1210_s18 = sadd.s32 4294967295, %s1392_s17   ;;  %p1214_p0 = scmp.ge.s32.totalorder %s1392_s17, 1  ;;  %s1392_s17 = sphi %s1466_s17, %s21_s17  }
   0x2   : > { %p354_p1 = scmp.lt.s32.totalorder %s1392_s17, 3 }
   0x4   : > { %p355_p2 = pnand %p1214_p0, %p354_p1 }
   0x5   : > { %p400_p3 = scmp.lt.s32.totalorder (!%p355_p2), %s1210_s18, 1  ;;  %vm420_vm0 = vcmask (!%p355_p2), 257024   ;;  %v1360_v7 = vld [vmem:[%s1621_s7] sm:$0xff] (!%p355_p2)   ;;  %v1394_v8 = vmov (!%p355_p2), 0.0   ;;  %v1361_v10 = vld [vmem:[%s1621_s7 + $0x8] sm:$0xff] (!%p355_p2)   ;;  %vm1395_vm1 = vmmov (!%p355_p2), 0  }
   0x6   : > { %358 = sbr.rel (%p355_p2) target bundleno = 1808 (0x710), region = 64  ;;  %1276 = vmatprep.subr.bf16.mxu1 (!%p355_p2), %v1394_v8  ;;  %1268 = vmatprep.subr.bf16.mxu0 (!%p355_p2), %v1394_v8  ;;  %v1362_v9 = vld [vmem:[%s1619_s5] sm:$0xff] (!%p355_p2)   ;;  %v1363_v12 = vld [vmem:[%s1619_s5 + $0x8] sm:$0xff] (!%p355_p2)   ;;  %vm482_vm2 = vcmask (!%p355_p2), 261120   ;;  %vm596_vm5 = vcmask (!%p355_p2), 64512   ;;  %s1396_s23 = smov (!%p355_p2), 120  }
   0x7   : > { %1277 = vmatpush3.bf16.msra.mxu1 (!%p355_p2), %v1360_v7  ;;  %1280 = vmatprep.mubr.msk.bf16.mxu1 (!%p355_p2), %vm1395_vm1, %v1394_v8  ;;  %v1219_v22 = vld [vmem:[%s1617_s3] ss:$0 sm:$0xff] (!%p355_p2)  ;;  %s1397_s24 = smov (!%p355_p2), 112   ;;  %vm646_vm7 = vcmask (!%p355_p2), 27648   ;;  %s1399_s12 = smov (!%p355_p2), 88   ;;  %vm666_vm8 = vcmask (!%p355_p2), 1041408  }
   0x8   : > { %1278 = vmatprep.subr.bf16.mxu1 (!%p355_p2), %v1394_v8  ;;  %1269 = vmatpush3.bf16.msra.mxu0 (!%p355_p2), %v1362_v9  ;;  %v1220_v25 = vld [vmem:[%s1618_s4] ss:$0 sm:$0xff] (!%p355_p2)  ;;  %s1400_s13 = smov (!%p355_p2), 96   ;;  %s1401_s14 = smov (!%p355_p2), 72   ;;  %vm662_vm9 = vcmask (!%p355_p2), 31744   ;;  %vm1060_vm10 = vcmask (!%p355_p2), 130048  }
   0x9   : > { %1270 = vmatprep.subr.bf16.mxu0 (!%p355_p2), %v1394_v8  ;;  %1272 = vmatprep.mubr.msk.bf16.mxu0 (!%p355_p2), %vm1395_vm1, %v1394_v8  ;;  %v1225_v29 = vld [vmem:[%s1622_s8] ss:$0 sm:$0xff] (!%p355_p2)  ;;  %s1402_s15 = smov (!%p355_p2), 80   ;;  %s1403_s16 = smov (!%p355_p2), 8   ;;  %vm1062_vm11 = vcmask (!%p355_p2), 195584  }
   0xa   : > { %v1221_v37 = vld [vmem:[%s1620_s6] ss:$0 sm:$0xff] (!%p355_p2) }
   0xb   : > { %1279 = vmatpush3.bf16.msra.mxu1 (!%p355_p2), %v1361_v10 }
   0xc   : > { %1271 = vmatpush3.bf16.msra.mxu0 (!%p355_p2), %v1363_v12  ;;  %1290 = vmatprep.subr.bf16.mxu1 (!%p355_p2), %v1394_v8 }
   0xd   : > { %s1627_s18 = smov (!%p400_p3, %s1210_s18), 1  ;;  %1284 = vmatprep.subr.bf16.mxu0 %v1394_v8 }
   0xe   : > { %s1474_s19 = sshll.u32 %s1627_s18, 2 }
   0xf   : > { %s403_s22 = scalar_lea.vmem %s1614_s0, %s1474_s19  ;;  %s407_s27 = scalar_lea.vmem %s1615_s1, %s1474_s19 }
  0x10   : > { %v1480_v0 = vld [vmem:[%s403_s22] sm:$0xf]  ;;  %s411_s30 = scalar_lea.vmem %s1616_s2, %s1474_s19  ;;  %s415_s29 = scalar_lea.vmem %s1625_s11, %s1474_s19 }
  0x11   : > { %v421_v1 = vsel %vm420_vm0, %v1480_v0, 0.0  ;;  %v457_v11 = vld [vmem:[%s407_s27] sm:$0xf]  ;;  %s1398_s27 = smov 104  }
  0x12   : > { %422 = vadd.xlane.f32.xlu0 %v421_v1  ;;  %v526_v13 = vpack.c.bf16 %v457_v11, %v457_v11  ;;  %v593_v53 = vld [vmem:[%s411_s30] sm:$0xf] }
  0x13   : > { %vm644_vm6 = vcmp.eq.f32.partialorder %v593_v53, 0.0 }
  0x14   : > { %1281 = vmatmul.mubr.msk.bf16.vlgmr.msra.gmra.mrb[0].mxu1 %vm482_vm2, %v526_v13 }
  0x15   : > { %1292 = vmatprep.mubr.msk.bf16.mxu1 %vm1395_vm1, %v1394_v8 }
  0x9f   : > { %v423_v2 = vpop.xlane.xlu0 %422 }
  0xa0   : > { %v425_v3 = vmul.f32 0.03125, %v423_v2 }
  0xa2   : > { %v426_v4 = vsub.f32 %v1480_v0, %v425_v3 }
  0xa4   : > { %v427_v5 = vmul.f32 %v426_v4, %v426_v4  ;;  %v439_v23 = vmul.f32 %v1219_v22, %v426_v4 }
  0xa6   : > { %v428_v6 = vsel %vm420_vm0, %v427_v5, 0.0 }
  0xa7   : > { %429 = vadd.xlane.f32.xlu0 %v428_v6 }
  0xe7   : > { %v587_v30 = vpop.f32.mrb[0].mxu1 }
  0xe8   : > { %v588_v31 = vadd.f32 %v1225_v29, %v587_v30  ;;  %v1282_v32 = vpop.f32.mrb[1].mxu1 }
  0xe9   : > { %v590_v33 = vpop.f32.mrb[2].mxu1 }
  0xea   : > { %v1527_v34 = vpack.c.bf16 %v588_v31, %v588_v31  ;;  %v1283_v35 = vpop.f32.mrb[3].mxu1 }
  0xec   : > { %713 = vrot.lane.b32.xlu1 %v1527_v34, %s1396_s23  ;;  %825 = vrot.lane.b32.xlu0 %v1527_v34, %s1397_s24  ;;  %v601_v36 = vsel %vm596_vm5, %v1527_v34, 0 }
 0x134   : > { %v430_v14 = vpop.xlane.xlu0 %429 }
 0x135   : > { %v432_v15 = vmul.f32 0.032258064, %v430_v14 }
 0x137   : > { %1366 = vrsqrt.f32 %v432_v15  ;;  %vm442_vm3 = vcmp.eq.f32.partialorder %v432_v15, inf  ;;  %v445_v18 = vand.u32 2147483648, %v432_v15  ;;  %vm444_vm4 = vcmp.eq.f32.partialorder %v432_v15, 0.0 }
 0x141   : > { %v1367_v16 = vpop.eup %1366 }
 0x142   : > { %v441_v17 = vmul.f32 %v1367_v16, %v432_v15 }
 0x144   : > { %v443_v19 = vsel %vm442_vm3, %v432_v15, %v441_v17 }
 0x145   : > { %v446_v20 = vsel %vm444_vm4, %v445_v18, %v443_v19 }
 0x146   : > { %v447_v21 = vadd.f32 1e-06, %v446_v20 }
 0x148   : > { %1368 = vrcp.f32 %v447_v21 }
 0x152   : > { %v1369_v24 = vpop.eup %1368 }
 0x153   : > { %v449_v26 = vmul.f32 %v1369_v24, %v439_v23 }
 0x155   : > { %v456_v27 = vadd.f32 %v1220_v25, %v449_v26 }
 0x157   : > { %v458_v28 = vpack.c.bf16 %v456_v27, %v456_v27 }
 0x159   : > { %1273 = vmatmul.mubr.msk.bf16.vlgmr.msra.gmra.mrb[0].mxu0 %vm482_vm2, %v458_v28 }
 0x15a   : > { %1286 = vmatprep.mubr.msk.bf16.mxu0 %vm1395_vm1, %v1394_v8  ;;  %1285 = vmatpush3.bf16.xpose.msra.mxu0 %v601_v36 }
 0x15b   : > { %1296 = vmatprep.subr.bf16.mxu0 %v1394_v8 }
 0x15e   : > { %v714_v39 = vpop.permute.xlu1 %713  ;;  %v826_v46 = vpop.permute.xlu0 %825 }
 0x15f   : > { %v719_v45 = vsel %vm596_vm5, %v714_v39, 0  ;;  %v831_v48 = vsel %vm596_vm5, %v826_v46, 0 }
 0x22c   : > { %v520_v38 = vpop.f32.mrb[0].mxu0 }
 0x22d   : > { %v521_v40 = vadd.f32 %v1221_v37, %v520_v38  ;;  %v1274_v41 = vpop.f32.mrb[1].mxu0 }
 0x22e   : > { %v523_v42 = vpop.f32.mrb[2].mxu0 }
 0x22f   : > { %v594_v43 = vpack.c.bf16 %v521_v40, %v521_v40  ;;  %v1275_v44 = vpop.f32.mrb[3].mxu0 }
 0x231   : > { %711 = vrot.lane.b32.xlu1 %v594_v43, %s1396_s23  ;;  %1287 = vmatmul.mubr.msk.bf16.vlgmr.msra.gmra.mrb[4].mxu0 %vm596_vm5, %v594_v43  ;;  %s1404_s23 = smov 16  }
 0x232   : > { %1297 = vmatpush3.bf16.xpose.msra.mxu0 %v719_v45  ;;  %1298 = vmatprep.mubr.msk.bf16.mxu0 %vm1395_vm1, %v1394_v8 }
 0x233   : > { %1308 = vmatprep.subr.bf16.mxu0 %v1394_v8 }
 0x235   : > { %823 = vrot.lane.b32.xlu1 %v594_v43, %s1397_s24  ;;  %s1405_s24 = smov 24  }
 0x239   : > { %937 = vrot.lane.b32.xlu1 %v1527_v34, %s1398_s27 }
 0x23d   : > { %935 = vrot.lane.b32.xlu1 %v594_v43, %s1398_s27 }
 0x2a3   : > { %v712_v47 = vpop.permute.xlu1 %711 }
 0x2a4   : > { %1299 = vmatmul.mubr.msk.bf16.vlgmr.msra.gmra.mrb[8].mxu0 %vm596_vm5, %v712_v47 }
 0x2a5   : > { %1309 = vmatpush3.bf16.xpose.msra.mxu0 %v831_v48  ;;  %1310 = vmatprep.mubr.msk.bf16.mxu0 %vm1395_vm1, %v1394_v8 }
 0x2a6   : > { %1320 = vmatprep.subr.bf16.mxu0 %v1394_v8 }
 0x2a7   : > { %v824_v49 = vpop.permute.xlu1 %823 }
 0x2ab   : > { %v938_v50 = vpop.permute.xlu1 %937 }
 0x2ac   : > { %v943_v51 = vsel %vm596_vm5, %v938_v50, 0  ;;  %1311 = vmatmul.mubr.msk.bf16.vlgmr.msra.gmra.mrb[12].mxu0 %vm596_vm5, %v824_v49 }
 0x2ad   : > { %1321 = vmatpush3.bf16.xpose.msra.mxu0 %v943_v51  ;;  %1322 = vmatprep.mubr.msk.bf16.mxu0 %vm1395_vm1, %v1394_v8 }
 0x2ae   : > { %1332 = vmatprep.subr.bf16.mxu0 %v1394_v8 }
 0x2af   : > { %v936_v52 = vpop.permute.xlu1 %935 }
 0x2b4   : > { %1323 = vmatmul.mubr.msk.bf16.vlgmr.msra.gmra.mrb[16].mxu0 %vm596_vm5, %v936_v52 }
 0x2b5   : > { %1336 = vmatprep.mubr.msk.bf16.mxu0 %vm1395_vm1, %v1394_v8 }
 0x304   : > { %v637_v54 = vpop.f32.mrb[4].mxu0 }
 0x305   : > { %v643_v55 = vmul.f32 0.35355338, %v637_v54  ;;  %v1288_v56 = vpop.f32.mrb[5].mxu0 }
 0x306   : > { %v640_v57 = vpop.f32.mrb[6].mxu0 }
 0x307   : > { %v1289_v58 = vpop.f32.mrb[7].mxu0  ;;  %v645_v59 = vsel %vm644_vm6, -1e+09, %v643_v55 }
 0x308   : > { %v647_v60 = vsel %vm646_vm7, %v645_v59, -inf }
 0x309   : > { %648 = vmax.xlane.f32.xlu1 %v647_v60 }
 0x377   : > { %v755_v61 = vpop.f32.mrb[8].mxu0 }
 0x378   : > { %v761_v62 = vmul.f32 0.35355338, %v755_v61  ;;  %v1300_v63 = vpop.f32.mrb[9].mxu0 }
 0x379   : > { %v758_v1 = vpop.f32.mrb[10].mxu0 }
 0x37a   : > { %v1301_v2 = vpop.f32.mrb[11].mxu0  ;;  %v762_v3 = vsel %vm644_vm6, -1e+09, %v761_v62 }
 0x37b   : > { %v763_v4 = vsel %vm646_vm7, %v762_v3, -inf }
 0x37c   : > { %764 = vmax.xlane.f32.xlu0 %v763_v4 }
 0x37f   : > { %v867_v5 = vpop.f32.mrb[12].mxu0 }
 0x380   : > { %v873_v6 = vmul.f32 0.35355338, %v867_v5  ;;  %v1312_v7 = vpop.f32.mrb[13].mxu0 }
 0x381   : > { %v870_v9 = vpop.f32.mrb[14].mxu0 }
 0x382   : > { %v1313_v10 = vpop.f32.mrb[15].mxu0  ;;  %v874_v11 = vsel %vm644_vm6, -1e+09, %v873_v6 }
 0x383   : > { %v875_v12 = vsel %vm646_vm7, %v874_v11, -inf  ;;  %v1364_v10 = vld [vmem:[%s1623_s9] sm:$0xff]  }
 0x384   : > { %876 = vmax.xlane.f32.xlu1 %v875_v12  ;;  %1333 = vmatpush3.bf16.msra.mxu0 %v1364_v10 }
 0x385   : > { %1334 = vmatprep.subr.bf16.mxu0 %v1394_v8 }
 0x387   : > { %v979_v13 = vpop.f32.mrb[16].mxu0 }
 0x388   : > { %v985_v14 = vmul.f32 0.35355338, %v979_v13  ;;  %v1324_v15 = vpop.f32.mrb[17].mxu0 }
 0x389   : > { %v982_v16 = vpop.f32.mrb[18].mxu0 }
 0x38a   : > { %v1325_v17 = vpop.f32.mrb[19].mxu0  ;;  %v986_v18 = vsel %vm644_vm6, -1e+09, %v985_v14 }
 0x38b   : > { %v987_v19 = vsel %vm646_vm7, %v986_v18, -inf }
 0x38c   : > { %988 = vmax.xlane.f32.xlu1 %v987_v19 }
 0x396   : > { %v649_v20 = vpop.xlane.xlu1 %648 }
 0x397   : > { %v650_v21 = vsub.f32 %v645_v59, %v649_v20 }
 0x399   : > { %v651_v22 = vmul.f32 1.442695, %v650_v21 }
 0x39b   : > { %1370 = vpow2.f32 %v651_v22 }
 0x3a5   : > { %v1371_v23 = vpop.eup %1370 }
 0x3a6   : > { %v653_v24 = vsel %vm646_vm7, %v1371_v23, 0.0 }
 0x3a7   : > { %654 = vadd.xlane.f32.xlu0 %v653_v24 }
 0x409   : > { %v765_v25 = vpop.xlane.xlu0 %764 }
 0x40a   : > { %v766_v26 = vsub.f32 %v762_v3, %v765_v25 }
 0x40c   : > { %v767_v27 = vmul.f32 1.442695, %v766_v26  ;;  %v1237_v26 = vld [vmem:[%s1624_s10] ss:$0 sm:$0xff] }
 0x40e   : > { %1372 = vpow2.f32 %v767_v27 }
 0x411   : > { %v877_v28 = vpop.xlane.xlu1 %876 }
 0x412   : > { %v878_v29 = vsub.f32 %v874_v11, %v877_v28  ;;  %v1365_v11 = vld [vmem:[%s1623_s9 + $0x8] sm:$0xff]  }
 0x413   : > { %1335 = vmatpush3.bf16.msra.mxu0 %v1365_v11 }
 0x414   : > { %v879_v30 = vmul.f32 1.442695, %v878_v29 }
 0x416   : > { %1374 = vpow2.f32 %v879_v30 }
 0x418   : > { %v1373_v31 = vpop.eup %1372 }
 0x419   : > { %v769_v32 = vsel %vm646_vm7, %v1373_v31, 0.0  ;;  %v989_v36 = vpop.xlane.xlu1 %988 }
 0x41a   : > { %770 = vadd.xlane.f32.xlu1 %v769_v32  ;;  %v990_v37 = vsub.f32 %v986_v18, %v989_v36 }
 0x41c   : > { %v991_v38 = vmul.f32 1.442695, %v990_v37 }
 0x41e   : > { %1376 = vpow2.f32 %v991_v38 }
 0x420   : > { %v1375_v33 = vpop.eup %1374 }
 0x421   : > { %v881_v35 = vsel %vm646_vm7, %v1375_v33, 0.0 }
 0x422   : > { %882 = vadd.xlane.f32.xlu0 %v881_v35 }
 0x428   : > { %v1377_v39 = vpop.eup %1376 }
 0x429   : > { %v993_v40 = vsel %vm646_vm7, %v1377_v39, 0.0 }
 0x42b   : > { %775 = vrot.lane.b32.xlu1 %v1527_v34, %s1399_s12 }
 0x434   : > { %v655_v41 = vpop.xlane.xlu0 %654 }
 0x435   : > { %1378 = vrcp.f32 %v655_v41 }
 0x438   : > { %660 = vrot.lane.b32.xlu0 %v1527_v34, %s1400_s13 }
 0x43c   : > { %999 = vrot.lane.b32.xlu0 %v1527_v34, %s1401_s14 }
 0x43f   : > { %v1379_v43 = vpop.eup %1378 }
 0x440   : > { %v657_v45 = vmul.f32 %v1379_v43, %v1371_v23 }
 0x442   : > { %v658_v49 = vpack.c.bf16 %v657_v45, %v657_v45 }
 0x44f   : > { %994 = vadd.xlane.f32.xlu1 %v993_v40 }
 0x460   : > { %887 = vrot.lane.b32.xlu1 %v1527_v34, %s1402_s15 }
 0x4a7   : > { %v771_v42 = vpop.xlane.xlu1 %770 }
 0x4a8   : > { %1380 = vrcp.f32 %v771_v42 }
 0x4ab   : > { %v776_v48 = vpop.permute.xlu1 %775 }
 0x4ac   : > { %v781_v34 = vsel %vm666_vm8, %v776_v48, 0 }
 0x4af   : > { %v883_v44 = vpop.xlane.xlu0 %882 }
 0x4b0   : > { %1382 = vrcp.f32 %v883_v44 }
 0x4b2   : > { %v1381_v50 = vpop.eup %1380 }
 0x4b3   : > { %v661_v46 = vpop.permute.xlu0 %660  ;;  %v773_v51 = vmul.f32 %v1381_v50, %v1373_v31 }
 0x4b4   : > { %v668_v47 = vsel %vm666_vm8, %v661_v46, 0 }
 0x4b5   : > { %1291 = vmatpush3.bf16.msra.mxu1 %v668_v47  ;;  %v774_v52 = vpack.c.bf16 %v773_v51, %v773_v51 }
 0x4b6   : > { %1302 = vmatprep.subr.bf16.mxu1 %v1394_v8 }
 0x4b7   : > { %v1000_v58 = vpop.permute.xlu0 %999 }
 0x4b8   : > { %1293 = vmatmul.mubr.msk.bf16.vlgmr.msra.gmra.mrb[4].mxu1 %vm662_vm9, %v658_v49  ;;  %v1005_v60 = vsel %vm666_vm8, %v1000_v58, 0 }
 0x4b9   : > { %1303 = vmatpush3.bf16.msra.mxu1 %v781_v34  ;;  %1304 = vmatprep.mubr.msk.bf16.mxu1 %vm1395_vm1, %v1394_v8 }
 0x4ba   : > { %1314 = vmatprep.subr.bf16.mxu1 %v1394_v8  ;;  %v1383_v53 = vpop.eup %1382 }
 0x4bb   : > { %v885_v55 = vmul.f32 %v1383_v53, %v1375_v33 }
 0x4bd   : > { %v886_v59 = vpack.c.bf16 %v885_v55, %v885_v55 }
 0x4c0   : > { %1305 = vmatmul.mubr.msk.bf16.vlgmr.msra.gmra.mrb[8].mxu1 %vm662_vm9, %v774_v52 }
 0x4c1   : > { %1316 = vmatprep.mubr.msk.bf16.mxu1 %vm1395_vm1, %v1394_v8 }
 0x4dc   : > { %v995_v54 = vpop.xlane.xlu1 %994 }
 0x4dd   : > { %1384 = vrcp.f32 %v995_v54 }
 0x4e0   : > { %v888_v56 = vpop.permute.xlu1 %887 }
 0x4e1   : > { %v893_v57 = vsel %vm666_vm8, %v888_v56, 0 }
 0x4e2   : > { %1315 = vmatpush3.bf16.msra.mxu1 %v893_v57 }
 0x4e3   : > { %1326 = vmatprep.subr.bf16.mxu1 %v1394_v8 }
 0x4e5   : > { %1317 = vmatmul.mubr.msk.bf16.vlgmr.msra.gmra.mrb[12].mxu1 %vm662_vm9, %v886_v59 }
 0x4e6   : > { %1327 = vmatpush3.bf16.msra.mxu1 %v1005_v60  ;;  %1328 = vmatprep.mubr.msk.bf16.mxu1 %vm1395_vm1, %v1394_v8 }
 0x4e7   : > { %v1385_v61 = vpop.eup %1384 }
 0x4e8   : > { %v997_v62 = vmul.f32 %v1385_v61, %v1377_v39 }
 0x4ea   : > { %v998_v63 = vpack.c.bf16 %v997_v62, %v997_v62 }
 0x4ed   : > { %1329 = vmatmul.mubr.msk.bf16.vlgmr.msra.gmra.mrb[16].mxu1 %vm662_vm9, %v998_v63 }
 0x58b   : > { %v704_v1 = vpop.f32.mrb[4].mxu1 }
 0x58c   : > { %v1294_v2 = vpop.f32.mrb[5].mxu1 }
 0x58d   : > { %v707_v3 = vpop.f32.mrb[6].mxu1 }
 0x58e   : > { %v1295_v4 = vpop.f32.mrb[7].mxu1 }
 0x593   : > { %v817_v5 = vpop.f32.mrb[8].mxu1 }
 0x594   : > { %1048 = vrot.lane.b32.xlu1 %v817_v5, %s1403_s16  ;;  %v1306_v6 = vpop.f32.mrb[9].mxu1 }
 0x595   : > { %v820_v7 = vpop.f32.mrb[10].mxu1 }
 0x596   : > { %v1307_v9 = vpop.f32.mrb[11].mxu1 }
 0x5b8   : > { %v929_v12 = vpop.f32.mrb[12].mxu1 }
 0x5b9   : > { %1052 = vrot.lane.b32.xlu0 %v929_v12, %s1404_s23  ;;  %v1318_v13 = vpop.f32.mrb[13].mxu1 }
 0x5ba   : > { %v932_v14 = vpop.f32.mrb[14].mxu1 }
 0x5bb   : > { %v1319_v15 = vpop.f32.mrb[15].mxu1 }
 0x5c0   : > { %v1041_v16 = vpop.f32.mrb[16].mxu1 }
 0x5c1   : > { %1056 = vrot.lane.b32.xlu1 %v1041_v16, %s1405_s24  ;;  %v1330_v17 = vpop.f32.mrb[17].mxu1 }
 0x5c2   : > { %v1044_v18 = vpop.f32.mrb[18].mxu1 }
 0x5c3   : > { %v1331_v19 = vpop.f32.mrb[19].mxu1 }
 0x606   : > { %v1049_v20 = vpop.permute.xlu1 %1048 }
 0x607   : > { %v1059_v21 = vsel %vm596_vm5, %v704_v1, %v1049_v20 }
 0x62b   : > { %v1053_v8 = vpop.permute.xlu0 %1052 }
 0x62c   : > { %v1061_v22 = vsel %vm1060_vm10, %v1059_v21, %v1053_v8 }
 0x633   : > { %v1057_v23 = vpop.permute.xlu1 %1056 }
 0x634   : > { %v1063_v24 = vsel %vm1062_vm11, %v1061_v22, %v1057_v23 }
 0x635   : > { %v1064_v25 = vpack.c.bf16 %v1063_v24, %v1063_v24 }
 0x637   : > { %1337 = vmatmul.mubr.msk.bf16.vlgmr.msra.gmra.mrb[20].mxu0 %vm482_vm2, %v1064_v25 }
 0x70a   : > { %v1125_v27 = vpop.f32.mrb[20].mxu0 }
 0x70b   : > { %v1126_v28 = vadd.f32 %v1237_v26, %v1125_v27  ;;  %v1338_v29 = vpop.f32.mrb[21].mxu0 }
 0x70c   : > { %v1128_v30 = vpop.f32.mrb[22].mxu0 }
 0x70d   : > { %v1131_v31 = vadd.f32 %v1126_v28, %v1480_v0  ;;  %v1339_v32 = vpop.f32.mrb[23].mxu0 }
 0x70f   : > { %1132 = vst.msk [vmem:[%s415_s29] sm:$0xf] %vm420_vm0, %v1131_v31 }
 0x710 PF: > { %s21_s17 = sadd.s32 1, %s1392_s17  }
 0x711   : > { %p18_p4 = scmp.ge.s32.totalorder %s21_s17, 4  }
 0x713   :  { %20 = sbr.rel (!%p18_p4) target bundleno = 1 (0x1), region = 100 }

// kernel: encoder_decoder_forward.12
= control target key start
LH: loop header
LB: loop body
LE: loop exit
PB: predicated region body
PF: predicated region fallthrough
CT: control target
= control target key end

     0   :  { %s1460_s16 = smov 0   ;;  %s1604_s0 = inlined_call_operand.vmem [shape: f32[2,4,32], index: 0, kind: input, shape index: {}, may-alias: {0,1}]   ;;  %s1605_s1 = inlined_call_operand.vmem [shape: f32[2,4,32], index: 1, kind: input, shape index: {}, may-alias: {0,1}]   ;;  %s1606_s2 = inlined_call_operand.vmem [shape: f32[2,4,4], index: 2, kind: input, shape index: {}]   ;;  %s1607_s3 = inlined_call_operand.vmem [shape: f32[1,32], index: 3, kind: input, shape index: {}]   ;;  %s1608_s4 = inlined_call_operand.vmem [shape: f32[1,32], index: 4, kind: input, shape index: {}]   ;;  %s1609_s5 = inlined_call_operand.vmem [shape: bf16[32,32], index: 5, kind: input, shape index: {}]   ;;  %s1610_s6 = inlined_call_operand.vmem [shape: f32[1,32], index: 6, kind: input, shape index: {}]   ;;  %s1611_s7 = inlined_call_operand.vmem [shape: bf16[32,64], index: 7, kind: input, shape index: {}]   ;;  %s1612_s8 = inlined_call_operand.vmem [shape: f32[1,64], index: 8, kind: input, shape index: {}]   ;;  %s1613_s9 = inlined_call_operand.vmem [shape: bf16[32,32], index: 9, kind: input, shape index: {}]   ;;  %s1614_s10 = inlined_call_operand.vmem [shape: f32[1,32], index: 10, kind: input, shape index: {}]   ;;  %s1615_s11 = inlined_call_operand.vmem [shape: f32[2,4,32], index: 11, kind: output, shape index: {}]  }
   0x1 LB: > { %s1205_s17 = sadd.s32 4294967295, %s1386_s16   ;;  %p1209_p0 = scmp.ge.s32.totalorder %s1386_s16, 1  ;;  %s1386_s16 = sphi %s1460_s16, %s21_s16  }
   0x2   : > { %p354_p1 = scmp.lt.s32.totalorder %s1386_s16, 3 }
   0x4   : > { %p355_p2 = pnand %p1209_p0, %p354_p1 }
   0x5   : > { %p400_p3 = scmp.lt.s32.totalorder (!%p355_p2), %s1205_s17, 1  ;;  %vm420_vm0 = vcmask (!%p355_p2), 257024   ;;  %v1354_v7 = vld [vmem:[%s1609_s5] sm:$0xff] (!%p355_p2)   ;;  %v1388_v9 = vmov (!%p355_p2), 0.0   ;;  %v1356_v10 = vld [vmem:[%s1609_s5 + $0x8] sm:$0xff] (!%p355_p2)   ;;  %vm1389_vm1 = vmmov (!%p355_p2), 0  }
   0x6   : > { %358 = sbr.rel (%p355_p2) target bundleno = 1816 (0x718), region = 64  ;;  %v1355_v8 = vld [vmem:[%s1611_s7] sm:$0xff] (!%p355_p2)   ;;  %1262 = vmatprep.subr.bf16.mxu0 (!%p355_p2), %v1388_v9  ;;  %1270 = vmatprep.subr.bf16.mxu1 (!%p355_p2), %v1388_v9  ;;  %v1357_v11 = vld [vmem:[%s1611_s7 + $0x8] sm:$0xff] (!%p355_p2)   ;;  %vm481_vm4 = vcmask (!%p355_p2), 261120   ;;  %vm591_vm5 = vcmask (!%p355_p2), 64512   ;;  %s1390_s20 = smov (!%p355_p2), 112  }
   0x7   : > { %1263 = vmatpush3.bf16.msra.mxu0 (!%p355_p2), %v1354_v7  ;;  %1271 = vmatpush3.bf16.msra.mxu1 (!%p355_p2), %v1355_v8  ;;  %v1213_v20 = vld [vmem:[%s1607_s3] ss:$0 sm:$0xff] (!%p355_p2)  ;;  %s1392_s22 = smov (!%p355_p2), 104   ;;  %vm641_vm7 = vcmask (!%p355_p2), 27648   ;;  %s1393_s26 = smov (!%p355_p2), 88   ;;  %vm661_vm8 = vcmask (!%p355_p2), 1041408  }
   0x8   : > { %1264 = vmatprep.subr.bf16.mxu0 (!%p355_p2), %v1388_v9  ;;  %1272 = vmatprep.subr.bf16.mxu1 (!%p355_p2), %v1388_v9  ;;  %v1214_v23 = vld [vmem:[%s1608_s4] ss:$0 sm:$0xff] (!%p355_p2)  ;;  %s1394_s27 = smov (!%p355_p2), 96   ;;  %s1395_s28 = smov (!%p355_p2), 72   ;;  %vm657_vm9 = vcmask (!%p355_p2), 31744   ;;  %vm1055_vm10 = vcmask (!%p355_p2), 130048  }
   0x9   : > { %1266 = vmatprep.mubr.msk.bf16.mxu0 (!%p355_p2), %vm1389_vm1, %v1388_v9  ;;  %1274 = vmatprep.mubr.msk.bf16.mxu1 (!%p355_p2), %vm1389_vm1, %v1388_v9  ;;  %v1219_v27 = vld [vmem:[%s1612_s8] ss:$0 sm:$0xff] (!%p355_p2)  ;;  %s1396_s1 = smov (!%p355_p2), 80   ;;  %s1397_s29 = smov (!%p355_p2), 8   ;;  %vm1057_vm11 = vcmask (!%p355_p2), 195584  }
   0xa   : > { %v1215_v28 = vld [vmem:[%s1610_s6] ss:$0 sm:$0xff] (!%p355_p2)  ;;  %s1398_s15 = smov (!%p355_p2), 16  }
   0xb   : > { %1265 = vmatpush3.bf16.msra.mxu0 (!%p355_p2), %v1356_v10  ;;  %1273 = vmatpush3.bf16.msra.mxu1 (!%p355_p2), %v1357_v11 }
   0xc   : > { %1278 = vmatprep.subr.bf16.mxu0 (!%p355_p2), %v1388_v9  ;;  %1284 = vmatprep.subr.bf16.mxu1 (!%p355_p2), %v1388_v9 }
   0xd   : > { %s1617_s17 = smov (!%p400_p3, %s1205_s17), 1 }
   0xe   : > { %s1468_s18 = sshll.u32 %s1617_s17, 2  ;;  %s1399_s17 = smov 24  }
   0xf   : > { %s403_s21 = scalar_lea.vmem %s1604_s0, %s1468_s18  ;;  %s411_s25 = scalar_lea.vmem %s1606_s2, %s1468_s18 }
  0x10   : > { %v1474_v0 = vld [vmem:[%s403_s21] sm:$0xf]  ;;  %s1391_s21 = smov 120   ;;  %s415_s23 = scalar_lea.vmem %s1615_s11, %s1468_s18 }
  0x11   : > { %v421_v1 = vsel %vm420_vm0, %v1474_v0, 0.0  ;;  %v588_v51 = vld [vmem:[%s411_s25] sm:$0xf] }
  0x12   : > { %422 = vadd.xlane.f32.xlu0 %v421_v1  ;;  %vm639_vm6 = vcmp.eq.f32.partialorder %v588_v51, 0.0 }
  0x9f   : > { %v423_v2 = vpop.xlane.xlu0 %422 }
  0xa0   : > { %v425_v3 = vmul.f32 0.03125, %v423_v2 }
  0xa2   : > { %v426_v4 = vsub.f32 %v1474_v0, %v425_v3 }
  0xa4   : > { %v427_v5 = vmul.f32 %v426_v4, %v426_v4  ;;  %v439_v21 = vmul.f32 %v1213_v20, %v426_v4 }
  0xa6   : > { %v428_v6 = vsel %vm420_vm0, %v427_v5, 0.0 }
  0xa7   : > { %429 = vadd.xlane.f32.xlu0 %v428_v6 }
 0x134   : > { %v430_v12 = vpop.xlane.xlu0 %429 }
 0x135   : > { %v432_v13 = vmul.f32 0.032258064, %v430_v12 }
 0x137   : > { %1360 = vrsqrt.f32 %v432_v13  ;;  %vm442_vm2 = vcmp.eq.f32.partialorder %v432_v13, inf  ;;  %v445_v16 = vand.u32 2147483648, %v432_v13  ;;  %vm444_vm3 = vcmp.eq.f32.partialorder %v432_v13, 0.0 }
 0x141   : > { %v1361_v14 = vpop.eup %1360 }
 0x142   : > { %v441_v15 = vmul.f32 %v1361_v14, %v432_v13 }
 0x144   : > { %v443_v17 = vsel %vm442_vm2, %v432_v13, %v441_v15 }
 0x145   : > { %v446_v18 = vsel %vm444_vm3, %v445_v16, %v443_v17 }
 0x146   : > { %v447_v19 = vadd.f32 1e-06, %v446_v18 }
 0x148   : > { %1362 = vrcp.f32 %v447_v19 }
 0x152   : > { %v1363_v22 = vpop.eup %1362 }
 0x153   : > { %v449_v24 = vmul.f32 %v1363_v22, %v439_v21 }
 0x155   : > { %v456_v25 = vadd.f32 %v1214_v23, %v449_v24 }
 0x157   : > { %v457_v26 = vpack.c.bf16 %v456_v25, %v456_v25 }
 0x159   : > { %1267 = vmatmul.mubr.msk.bf16.vlgmr.msra.gmra.mrb[0].mxu0 %vm481_vm4, %v457_v26  ;;  %1275 = vmatmul.mubr.msk.bf16.vlgmr.msra.gmra.mrb[0].mxu1 %vm481_vm4, %v457_v26 }
 0x15a   : > { %1280 = vmatprep.mubr.msk.bf16.mxu0 %vm1389_vm1, %v1388_v9  ;;  %1286 = vmatprep.mubr.msk.bf16.mxu1 %vm1389_vm1, %v1388_v9 }
 0x22c   : > { %v519_v29 = vpop.f32.mrb[0].mxu0  ;;  %v582_v30 = vpop.f32.mrb[0].mxu1 }
 0x22d   : > { %v583_v31 = vadd.f32 %v1219_v27, %v582_v30  ;;  %v1268_v32 = vpop.f32.mrb[1].mxu0  ;;  %v1276_v33 = vpop.f32.mrb[1].mxu1  ;;  %v520_v36 = vadd.f32 %v1215_v28, %v519_v29 }
 0x22e   : > { %v522_v34 = vpop.f32.mrb[2].mxu0  ;;  %v585_v35 = vpop.f32.mrb[2].mxu1 }
 0x22f   : > { %v1520_v37 = vpack.c.bf16 %v583_v31, %v583_v31  ;;  %v1269_v38 = vpop.f32.mrb[3].mxu0  ;;  %v1277_v39 = vpop.f32.mrb[3].mxu1  ;;  %v589_v41 = vpack.c.bf16 %v520_v36, %v520_v36 }
 0x231   : > { %820 = vrot.lane.b32.xlu0 %v1520_v37, %s1390_s20  ;;  %708 = vrot.lane.b32.xlu1 %v1520_v37, %s1391_s21  ;;  %v596_v40 = vsel %vm591_vm5, %v1520_v37, 0 }
 0x232   : > { %1279 = vmatpush3.bf16.xpose.msra.mxu0 %v596_v40 }
 0x233   : > { %1290 = vmatprep.subr.bf16.mxu0 %v1388_v9 }
 0x235   : > { %706 = vrot.lane.b32.xlu1 %v589_v41, %s1391_s21 }
 0x239   : > { %818 = vrot.lane.b32.xlu1 %v589_v41, %s1390_s20  ;;  %1281 = vmatmul.mubr.msk.bf16.vlgmr.msra.gmra.mrb[4].mxu0 %vm591_vm5, %v589_v41 }
 0x23a   : > { %1292 = vmatprep.mubr.msk.bf16.mxu0 %vm1389_vm1, %v1388_v9 }
 0x23d   : > { %932 = vrot.lane.b32.xlu1 %v1520_v37, %s1392_s22 }
 0x241   : > { %930 = vrot.lane.b32.xlu1 %v589_v41, %s1392_s22 }
 0x2a3   : > { %v709_v42 = vpop.permute.xlu1 %708  ;;  %v821_v45 = vpop.permute.xlu0 %820 }
 0x2a4   : > { %v714_v43 = vsel %vm591_vm5, %v709_v42, 0  ;;  %v826_v47 = vsel %vm591_vm5, %v821_v45, 0 }
 0x2a5   : > { %1291 = vmatpush3.bf16.xpose.msra.mxu0 %v714_v43 }
 0x2a6   : > { %1302 = vmatprep.subr.bf16.mxu0 %v1388_v9 }
 0x2a7   : > { %v707_v44 = vpop.permute.xlu1 %706 }
 0x2ab   : > { %v819_v46 = vpop.permute.xlu1 %818 }
 0x2ac   : > { %1293 = vmatmul.mubr.msk.bf16.vlgmr.msra.gmra.mrb[8].mxu0 %vm591_vm5, %v707_v44 }
 0x2ad   : > { %1303 = vmatpush3.bf16.xpose.msra.mxu0 %v826_v47  ;;  %1304 = vmatprep.mubr.msk.bf16.mxu0 %vm1389_vm1, %v1388_v9 }
 0x2ae   : > { %1314 = vmatprep.subr.bf16.mxu0 %v1388_v9 }
 0x2af   : > { %v933_v48 = vpop.permute.xlu1 %932 }
 0x2b0   : > { %v938_v49 = vsel %vm591_vm5, %v933_v48, 0 }
 0x2b3   : > { %v931_v50 = vpop.permute.xlu1 %930 }
 0x2b4   : > { %1305 = vmatmul.mubr.msk.bf16.vlgmr.msra.gmra.mrb[12].mxu0 %vm591_vm5, %v819_v46 }
 0x2b5   : > { %1315 = vmatpush3.bf16.xpose.msra.mxu0 %v938_v49  ;;  %1316 = vmatprep.mubr.msk.bf16.mxu0 %vm1389_vm1, %v1388_v9 }
 0x2b6   : > { %1326 = vmatprep.subr.bf16.mxu0 %v1388_v9 }
 0x2bc   : > { %1317 = vmatmul.mubr.msk.bf16.vlgmr.msra.gmra.mrb[16].mxu0 %vm591_vm5, %v931_v50 }
 0x2bd   : > { %1330 = vmatprep.mubr.msk.bf16.mxu0 %vm1389_vm1, %v1388_v9 }
 0x30c   : > { %v632_v52 = vpop.f32.mrb[4].mxu0 }
 0x30d   : > { %v638_v53 = vmul.f32 0.35355338, %v632_v52  ;;  %v1282_v54 = vpop.f32.mrb[5].mxu0 }
 0x30e   : > { %v635_v55 = vpop.f32.mrb[6].mxu0 }
 0x30f   : > { %v1283_v56 = vpop.f32.mrb[7].mxu0  ;;  %v640_v57 = vsel %vm639_vm6, -1e+09, %v638_v53 }
 0x310   : > { %v642_v58 = vsel %vm641_vm7, %v640_v57, -inf }
 0x311   : > { %643 = vmax.xlane.f32.xlu1 %v642_v58 }
 0x37f   : > { %v750_v59 = vpop.f32.mrb[8].mxu0 }
 0x380   : > { %v756_v60 = vmul.f32 0.35355338, %v750_v59  ;;  %v1294_v61 = vpop.f32.mrb[9].mxu0 }
 0x381   : > { %v753_v62 = vpop.f32.mrb[10].mxu0 }
 0x382   : > { %v1295_v63 = vpop.f32.mrb[11].mxu0  ;;  %v757_v1 = vsel %vm639_vm6, -1e+09, %v756_v60 }
 0x383   : > { %v758_v2 = vsel %vm641_vm7, %v757_v1, -inf }
 0x384   : > { %759 = vmax.xlane.f32.xlu0 %v758_v2 }
 0x387   : > { %v862_v3 = vpop.f32.mrb[12].mxu0 }
 0x388   : > { %v868_v4 = vmul.f32 0.35355338, %v862_v3  ;;  %v1306_v5 = vpop.f32.mrb[13].mxu0 }
 0x389   : > { %v865_v6 = vpop.f32.mrb[14].mxu0 }
 0x38a   : > { %v1307_v7 = vpop.f32.mrb[15].mxu0  ;;  %v869_v8 = vsel %vm639_vm6, -1e+09, %v868_v4 }
 0x38b   : > { %v870_v10 = vsel %vm641_vm7, %v869_v8, -inf  ;;  %v1358_v7 = vld [vmem:[%s1613_s9] sm:$0xff]  }
 0x38c   : > { %871 = vmax.xlane.f32.xlu1 %v870_v10  ;;  %1327 = vmatpush3.bf16.msra.mxu0 %v1358_v7 }
 0x38d   : > { %1328 = vmatprep.subr.bf16.mxu0 %v1388_v9 }
 0x38f   : > { %v974_v11 = vpop.f32.mrb[16].mxu0 }
 0x390   : > { %v980_v12 = vmul.f32 0.35355338, %v974_v11  ;;  %v1318_v13 = vpop.f32.mrb[17].mxu0 }
 0x391   : > { %v977_v14 = vpop.f32.mrb[18].mxu0 }
 0x392   : > { %v1319_v15 = vpop.f32.mrb[19].mxu0  ;;  %v981_v16 = vsel %vm639_vm6, -1e+09, %v980_v12 }
 0x393   : > { %v982_v17 = vsel %vm641_vm7, %v981_v16, -inf }
 0x394   : > { %983 = vmax.xlane.f32.xlu1 %v982_v17 }
 0x39e   : > { %v644_v18 = vpop.xlane.xlu1 %643 }
 0x39f   : > { %v645_v19 = vsub.f32 %v640_v57, %v644_v18 }
 0x3a1   : > { %v646_v20 = vmul.f32 1.442695, %v645_v19 }
 0x3a3   : > { %1364 = vpow2.f32 %v646_v20 }
 0x3ad   : > { %v1365_v21 = vpop.eup %1364 }
 0x3ae   : > { %v648_v22 = vsel %vm641_vm7, %v1365_v21, 0.0 }
 0x3af   : > { %649 = vadd.xlane.f32.xlu0 %v648_v22 }
 0x411   : > { %v760_v23 = vpop.xlane.xlu0 %759 }
 0x412   : > { %v761_v24 = vsub.f32 %v757_v1, %v760_v23 }
 0x414   : > { %v762_v25 = vmul.f32 1.442695, %v761_v24  ;;  %v1231_v24 = vld [vmem:[%s1614_s10] ss:$0 sm:$0xff] }
 0x416   : > { %1366 = vpow2.f32 %v762_v25 }
 0x419   : > { %v872_v26 = vpop.xlane.xlu1 %871 }
 0x41a   : > { %v873_v27 = vsub.f32 %v869_v8, %v872_v26  ;;  %v1359_v8 = vld [vmem:[%s1613_s9 + $0x8] sm:$0xff]  }
 0x41b   : > { %1329 = vmatpush3.bf16.msra.mxu0 %v1359_v8 }
 0x41c   : > { %v874_v28 = vmul.f32 1.442695, %v873_v27 }
 0x41e   : > { %1368 = vpow2.f32 %v874_v28 }
 0x420   : > { %v1367_v29 = vpop.eup %1366 }
 0x421   : > { %v764_v30 = vsel %vm641_vm7, %v1367_v29, 0.0  ;;  %v984_v33 = vpop.xlane.xlu1 %983 }
 0x422   : > { %765 = vadd.xlane.f32.xlu1 %v764_v30  ;;  %v985_v34 = vsub.f32 %v981_v16, %v984_v33 }
 0x424   : > { %v986_v35 = vmul.f32 1.442695, %v985_v34 }
 0x426   : > { %1370 = vpow2.f32 %v986_v35 }
 0x428   : > { %v1369_v31 = vpop.eup %1368 }
 0x429   : > { %v876_v32 = vsel %vm641_vm7, %v1369_v31, 0.0 }
 0x42a   : > { %877 = vadd.xlane.f32.xlu0 %v876_v32 }
 0x430   : > { %v1371_v36 = vpop.eup %1370 }
 0x431   : > { %v988_v38 = vsel %vm641_vm7, %v1371_v36, 0.0 }
 0x433   : > { %770 = vrot.lane.b32.xlu1 %v1520_v37, %s1393_s26 }
 0x43c   : > { %v650_v39 = vpop.xlane.xlu0 %649 }
 0x43d   : > { %1372 = vrcp.f32 %v650_v39 }
 0x440   : > { %655 = vrot.lane.b32.xlu0 %v1520_v37, %s1394_s27 }
 0x444   : > { %994 = vrot.lane.b32.xlu0 %v1520_v37, %s1395_s28 }
 0x447   : > { %v1373_v41 = vpop.eup %1372 }
 0x448   : > { %v652_v43 = vmul.f32 %v1373_v41, %v1365_v21 }
 0x44a   : > { %v653_v47 = vpack.c.bf16 %v652_v43, %v652_v43 }
 0x457   : > { %989 = vadd.xlane.f32.xlu1 %v988_v38 }
 0x468   : > { %882 = vrot.lane.b32.xlu1 %v1520_v37, %s1396_s1 }
 0x4af   : > { %v766_v40 = vpop.xlane.xlu1 %765 }
 0x4b0   : > { %1374 = vrcp.f32 %v766_v40 }
 0x4b3   : > { %v771_v46 = vpop.permute.xlu1 %770 }
 0x4b4   : > { %v776_v37 = vsel %vm661_vm8, %v771_v46, 0 }
 0x4b7   : > { %v878_v42 = vpop.xlane.xlu0 %877 }
 0x4b8   : > { %1376 = vrcp.f32 %v878_v42 }
 0x4ba   : > { %v1375_v48 = vpop.eup %1374 }
 0x4bb   : > { %v656_v44 = vpop.permute.xlu0 %655  ;;  %v768_v49 = vmul.f32 %v1375_v48, %v1367_v29 }
 0x4bc   : > { %v663_v45 = vsel %vm661_vm8, %v656_v44, 0 }
 0x4bd   : > { %1285 = vmatpush3.bf16.msra.mxu1 %v663_v45  ;;  %v769_v50 = vpack.c.bf16 %v768_v49, %v768_v49 }
 0x4be   : > { %1296 = vmatprep.subr.bf16.mxu1 %v1388_v9 }
 0x4bf   : > { %v995_v56 = vpop.permute.xlu0 %994 }
 0x4c0   : > { %1287 = vmatmul.mubr.msk.bf16.vlgmr.msra.gmra.mrb[4].mxu1 %vm657_vm9, %v653_v47  ;;  %v1000_v58 = vsel %vm661_vm8, %v995_v56, 0 }
 0x4c1   : > { %1297 = vmatpush3.bf16.msra.mxu1 %v776_v37  ;;  %1298 = vmatprep.mubr.msk.bf16.mxu1 %vm1389_vm1, %v1388_v9 }
 0x4c2   : > { %1308 = vmatprep.subr.bf16.mxu1 %v1388_v9  ;;  %v1377_v51 = vpop.eup %1376 }
 0x4c3   : > { %v880_v53 = vmul.f32 %v1377_v51, %v1369_v31 }
 0x4c5   : > { %v881_v57 = vpack.c.bf16 %v880_v53, %v880_v53 }
 0x4c8   : > { %1299 = vmatmul.mubr.msk.bf16.vlgmr.msra.gmra.mrb[8].mxu1 %vm657_vm9, %v769_v50 }
 0x4c9   : > { %1310 = vmatprep.mubr.msk.bf16.mxu1 %vm1389_vm1, %v1388_v9 }
 0x4e4   : > { %v990_v52 = vpop.xlane.xlu1 %989 }
 0x4e5   : > { %1378 = vrcp.f32 %v990_v52 }
 0x4e8   : > { %v883_v54 = vpop.permute.xlu1 %882 }
 0x4e9   : > { %v888_v55 = vsel %vm661_vm8, %v883_v54, 0 }
 0x4ea   : > { %1309 = vmatpush3.bf16.msra.mxu1 %v888_v55 }
 0x4eb   : > { %1320 = vmatprep.subr.bf16.mxu1 %v1388_v9 }
 0x4ed   : > { %1311 = vmatmul.mubr.msk.bf16.vlgmr.msra.gmra.mrb[12].mxu1 %vm657_vm9, %v881_v57 }
 0x4ee   : > { %1321 = vmatpush3.bf16.msra.mxu1 %v1000_v58  ;;  %1322 = vmatprep.mubr.msk.bf16.mxu1 %vm1389_vm1, %v1388_v9 }
 0x4ef   : > { %v1379_v59 = vpop.eup %1378 }
 0x4f0   : > { %v992_v60 = vmul.f32 %v1379_v59, %v1371_v36 }
 0x4f2   : > { %v993_v61 = vpack.c.bf16 %v992_v60, %v992_v60 }
 0x4f5   : > { %1323 = vmatmul.mubr.msk.bf16.vlgmr.msra.gmra.mrb[16].mxu1 %vm657_vm9, %v993_v61 }
 0x593   : > { %v699_v62 = vpop.f32.mrb[4].mxu1 }
 0x594   : > { %v1288_v63 = vpop.f32.mrb[5].mxu1 }
 0x595   : > { %v702_v1 = vpop.f32.mrb[6].mxu1 }
 0x596   : > { %v1289_v2 = vpop.f32.mrb[7].mxu1 }
 0x59b   : > { %v812_v3 = vpop.f32.mrb[8].mxu1 }
 0x59c   : > { %1043 = vrot.lane.b32.xlu1 %v812_v3, %s1397_s29  ;;  %v1300_v4 = vpop.f32.mrb[9].mxu1 }
 0x59d   : > { %v815_v5 = vpop.f32.mrb[10].mxu1 }
 0x59e   : > { %v1301_v6 = vpop.f32.mrb[11].mxu1 }
 0x5c0   : > { %v924_v10 = vpop.f32.mrb[12].mxu1 }
 0x5c1   : > { %1047 = vrot.lane.b32.xlu0 %v924_v10, %s1398_s15  ;;  %v1312_v11 = vpop.f32.mrb[13].mxu1 }
 0x5c2   : > { %v927_v12 = vpop.f32.mrb[14].mxu1 }
 0x5c3   : > { %v1313_v13 = vpop.f32.mrb[15].mxu1 }
 0x5c8   : > { %v1036_v14 = vpop.f32.mrb[16].mxu1 }
 0x5c9   : > { %1051 = vrot.lane.b32.xlu1 %v1036_v14, %s1399_s17  ;;  %v1324_v15 = vpop.f32.mrb[17].mxu1 }
 0x5ca   : > { %v1039_v16 = vpop.f32.mrb[18].mxu1 }
 0x5cb   : > { %v1325_v17 = vpop.f32.mrb[19].mxu1 }
 0x60e   : > { %v1044_v18 = vpop.permute.xlu1 %1043 }
 0x60f   : > { %v1054_v19 = vsel %vm591_vm5, %v699_v62, %v1044_v18 }
 0x633   : > { %v1048_v9 = vpop.permute.xlu0 %1047 }
 0x634   : > { %v1056_v20 = vsel %vm1055_vm10, %v1054_v19, %v1048_v9 }
 0x63b   : > { %v1052_v21 = vpop.permute.xlu1 %1051 }
 0x63c   : > { %v1058_v22 = vsel %vm1057_vm11, %v1056_v20, %v1052_v21 }
 0x63d   : > { %v1059_v23 = vpack.c.bf16 %v1058_v22, %v1058_v22 }
 0x63f   : > { %1331 = vmatmul.mubr.msk.bf16.vlgmr.msra.gmra.mrb[20].mxu0 %vm481_vm4, %v1059_v23 }
 0x712   : > { %v1120_v25 = vpop.f32.mrb[20].mxu0 }
 0x713   : > { %v1121_v26 = vadd.f32 %v1231_v24, %v1120_v25  ;;  %v1332_v27 = vpop.f32.mrb[21].mxu0 }
 0x714   : > { %v1123_v28 = vpop.f32.mrb[22].mxu0 }
 0x715   : > { %v1126_v29 = vadd.f32 %v1121_v26, %v1474_v0  ;;  %v1333_v30 = vpop.f32.mrb[23].mxu0 }
 0x717   : > { %1127 = vst.msk [vmem:[%s415_s23] sm:$0xf] %vm420_vm0, %v1126_v29 }
 0x718 PF: > { %s21_s16 = sadd.s32 1, %s1386_s16  }
 0x719   : > { %p18_p4 = scmp.ge.s32.totalorder %s21_s16, 4  }
 0x71b   :  { %20 = sbr.rel (!%p18_p4) target bundleno = 1 (0x1), region = 100 }

// kernel: encoder_decoder_forward.23
= control target key start
LH: loop header
LB: loop body
LE: loop exit
PB: predicated region body
PF: predicated region fallthrough
CT: control target
= control target key end

     0   :  { %vm18_vm0 = vcmask 261120   ;;  %s146_s0 = inlined_call_operand.vmem [shape: f32[8,32], index: 0, kind: input, shape index: {}]   ;;  %s147_s1 = inlined_call_operand.vmem [shape: f32[1,32], index: 1, kind: input, shape index: {}]   ;;  %s148_s2 = inlined_call_operand.vmem [shape: f32[1,32], index: 2, kind: input, shape index: {}]   ;;  %s149_s3 = inlined_call_operand.hbm [shape: f32[8,32], index: 3, kind: output, shape index: {}]  }
   0x1   :  { %v15_v0 = vld [vmem:[%s146_s0] sm:$0xff] }
   0x2   :  { %8 = vsyncpa [#allocation3], 0  ;;  %v19_v1 = vsel %vm18_vm0, %v15_v0, 0.0  ;;  %v70_v15 = vld [vmem:[%s147_s1] ss:$0 sm:$0xff]  ;;  %s101_s17 = smov [#allocation2]  }
   0x3   :  { %20 = vadd.xlane.f32.xlu0 %v19_v1  ;;  %v71_v18 = vld [vmem:[%s148_s2] ss:$0 sm:$0xff]  ;;  %s62_s18 = sshll.u32 %s101_s17, 4  ;;  %s63_s18 = int_to_ptr.vmem [resolvable:$true] %s62_s18 }
   0x4   :  { %s77_s19 = scalar_lea.vmem %s63_s18, 128  ;;  %p82_p1 = scmp.lt.s32.totalorder %s63_s18, %s63_s18 }
   0x5   :  { %p78_p0 = scmp.ne.s32.totalorder %s63_s18, %s77_s19  ;;  %p83_p2 = scmp.lt.s32.totalorder %s77_s19, %s77_s19 }
   0x7   :  { %p84_p3 = por %p83_p2, %p82_p1 }
   0x9   :  { %p85_p4 = pnand %p84_p3, %p78_p0 }
  0x90   :  { %v21_v2 = vpop.xlane.xlu0 %20 }
  0x91   :  { %v23_v3 = vmul.f32 0.03125, %v21_v2 }
  0x93   :  { %v24_v4 = vsub.f32 %v15_v0, %v23_v3 }
  0x95   :  { %v25_v5 = vmul.f32 %v24_v4, %v24_v4  ;;  %v37_v16 = vmul.f32 %v70_v15, %v24_v4 }
  0x97   :  { %v26_v6 = vsel %vm18_vm0, %v25_v5, 0.0 }
  0x98   :  { %27 = vadd.xlane.f32.xlu0 %v26_v6 }
 0x125   :  { %v28_v7 = vpop.xlane.xlu0 %27 }
 0x126   :  { %v30_v8 = vmul.f32 0.032258064, %v28_v7 }
 0x128   :  { %73 = vrsqrt.f32 %v30_v8  ;;  %vm40_vm1 = vcmp.eq.f32.partialorder %v30_v8, inf  ;;  %v43_v11 = vand.u32 2147483648, %v30_v8  ;;  %vm42_vm2 = vcmp.eq.f32.partialorder %v30_v8, 0.0 }
 0x132   :  { %v74_v9 = vpop.eup %73 }
 0x133   :  { %v39_v10 = vmul.f32 %v74_v9, %v30_v8 }
 0x135   :  { %v41_v12 = vsel %vm40_vm1, %v30_v8, %v39_v10 }
 0x136   :  { %v44_v13 = vsel %vm42_vm2, %v43_v11, %v41_v12 }
 0x137   :  { %v45_v14 = vadd.f32 1e-06, %v44_v13 }
 0x139   :  { %75 = vrcp.f32 %v45_v14 }
 0x143   :  { %v76_v17 = vpop.eup %75 }
 0x144   :  { %v47_v19 = vmul.f32 %v76_v17, %v37_v16 }
 0x146   :  { %v54_v20 = vadd.f32 %v71_v18, %v47_v19 }
 0x148   :  { %55 = vst.msk [vmem:[#allocation2] sm:$0xff] %vm18_vm0, %v54_v20 }
 0x149   :  { %88 = shalt.err (!%p85_p4)
}
 0x14a   :  { %s89_s21 = scalar_lea.hbm %s149_s3, 128 }
 0x14b   :  { %p90_p5 = scmp.ne.s32.totalorder %s149_s3, %s89_s21  ;;  %p93_p6 = scmp.lt.u32.totalorder %s89_s21, %s149_s3 }
 0x14d   :  { %p95_p7 = pnand %p93_p6, %p90_p5 }
 0x14f   :  { %98 = shalt.err (!%p95_p7)
}
 0x150   :  { %65 = dma.vmem_to_hbm [thread:$0]  %s63_s18, 128, %s149_s3, [#allocation3]  }
 0x151   :  { %99 = dma.done.wait [#allocation3], 128  }
 0x152   :  { %100 = vsyncadd [#allocation3], 4294967168 }
 0x153   :  { %69 = vsyncpa [#allocation3], 1 }

</bundles_post_ra>
